<compile_context>
chip_gen: v6e
topology: v6e:2x2x1
jax: 0.10.0
libtpu: 0.0.40
codegen_flags: <defaults>
</compile_context>

<pallas_src>
import jax
import jax.numpy as jnp
from jax.experimental import pallas as pl
from jax.experimental.pallas import tpu as pltpu

# ----------------------------- config (small) -------------------------------
B = 2            # batch
S = 8            # sequence length
H = 32           # bert hidden size
NH = 2           # attention heads
DH = H // NH     # head dim
INTER = 64       # FFN intermediate size
NLAYERS = 2      # encoder layers
VOCAB = 100
MAXPOS = 16
GCN_IN = 32      # (original module hardcodes 768 = bert hidden; scaled down)
GCN_HID = 16
NUM_CLASSES = 3
N_NODES = 6


# ----------------------------- fused Pallas kernel --------------------------
def _layernorm(x, g, b):
    mu = jnp.mean(x, axis=-1, keepdims=True)
    var = jnp.mean(jnp.square(x - mu), axis=-1, keepdims=True)
    return (x - mu) * jax.lax.rsqrt(var + 1e-12) * g + b


def _forward_kernel(
    emb_ref, mask_ref, adj_ref, feat_ref,
    emb_ln_g_ref, emb_ln_b_ref,
    wqkv_ref, bqkv_ref, wo_ref, bo_ref, ln1_g_ref, ln1_b_ref,
    w1_ref, b1_ref, w2_ref, b2_ref, ln2_g_ref, ln2_b_ref,
    pool_w_ref, pool_b_ref,
    gcn_w_ref, gcn_b_ref, gcn_fc_w_ref, gcn_fc_b_ref,
    gate_wb_ref, gate_wg_ref, gate_b_ref,
    fc_w_ref, fc_b_ref,
    logits_ref,
):
    f32 = jnp.float32
    scale = 1.0 / (DH ** 0.5)

    # ---- embedding LayerNorm ------------------------------------------------
    x = _layernorm(emb_ref[...], emb_ln_g_ref[...], emb_ln_b_ref[...])  # (B*S,H)

    # additive attention-mask bias over keys: (B, 1, S) — hoisted out of the
    # layer loop (same bias every layer, every head).
    bias = ((1.0 - mask_ref[...]) * -10000.0)[:, None, :]

    # ---- encoder layers (statically unrolled, weights VMEM-resident) --------
    for l in range(NLAYERS):
        # fused QKV projection: (B*S, H) @ (H, 3H) -> (B*S, 3H)
        qkv = jnp.dot(x, wqkv_ref[l], preferred_element_type=f32) + bqkv_ref[l]

        # per-head attention; output projection accumulated per head so no
        # in-kernel concat of head contexts is needed.
        attn_out = jnp.broadcast_to(bo_ref[l], (B * S, H))
        for h in range(NH):
            q = qkv[:, h * DH:(h + 1) * DH].reshape(B, S, DH)
            k = qkv[:, H + h * DH:H + (h + 1) * DH].reshape(B, S, DH)
            v = qkv[:, 2 * H + h * DH:2 * H + (h + 1) * DH].reshape(B, S, DH)
            s = jnp.einsum("bqd,bkd->bqk", q, k,
                           preferred_element_type=f32) * scale
            s = s + bias
            s = s - jnp.max(s, axis=-1, keepdims=True)
            p = jnp.exp(s)
            p = p * pl.reciprocal(jnp.sum(p, axis=-1, keepdims=True), approx=True)
            c = jnp.einsum("bqk,bkd->bqd", p, v,
                           preferred_element_type=f32).reshape(B * S, DH)
            attn_out = attn_out + jnp.dot(
                c, wo_ref[l, h * DH:(h + 1) * DH, :], preferred_element_type=f32)

        x = _layernorm(attn_out + x, ln1_g_ref[l], ln1_b_ref[l])

        # GELU FFN (tanh approx; see TODO at top of file)
        hmid = jax.nn.gelu(jnp.dot(x, w1_ref[l], preferred_element_type=f32)
                           + b1_ref[l])
        ff = jnp.dot(hmid, w2_ref[l], preferred_element_type=f32) + b2_ref[l]
        x = _layernorm(ff + x, ln2_g_ref[l], ln2_b_ref[l])

    # ---- BERT pooler (CLS token, layer_idx == -1) ----------------------------
    cls = x.reshape(B, S, H)[:, 0, :]                                   # (B, H)
    pooled = jnp.tanh(jnp.dot(cls, pool_w_ref[...],
                              preferred_element_type=f32) + pool_b_ref[...])

    # ---- GCN: normalize adjacency, GraphConv(norm='both'), mean over nodes --
    adj = adj_ref[...]
    deg_r = jnp.maximum(jnp.sum(adj, axis=1, keepdims=True), 1.0)       # (N, 1)
    deg_c = jnp.maximum(jnp.sum(adj, axis=0, keepdims=True), 1.0)       # (1, N)
    adj_norm = jax.lax.rsqrt(deg_r) * adj * jax.lax.rsqrt(deg_c)
    xw = jnp.dot(feat_ref[...], gcn_w_ref[...], preferred_element_type=f32)
    gh = jnp.dot(adj_norm, xw, preferred_element_type=f32) + gcn_b_ref[...]
    gmean = jnp.mean(gh, axis=0, keepdims=True)                         # (1, GCN_HID)

    # gcn_fc applied to the (1, GCN_HID) mean, then broadcast over batch —
    # identical to applying it after the batch expansion in the reference.
    gcn_out = (jnp.dot(gmean, gcn_fc_w_ref[...], preferred_element_type=f32)
               + gcn_fc_b_ref[...])                                     # (1, H)
    gcn_out = jnp.broadcast_to(gcn_out, (B, H))

    # ---- gate / fuse / classify ----------------------------------------------
    # gating_layer on concat([bert, gcn]) split into two half-matmuls:
    # [bert, gcn] @ Wg == bert @ Wg_bert + gcn @ Wg_gcn   (no in-kernel concat)
    gate_logits = (jnp.dot(pooled, gate_wb_ref[...], preferred_element_type=f32)
                   + jnp.dot(gcn_out, gate_wg_ref[...], preferred_element_type=f32)
                   + gate_b_ref[...])                                   # (B, 2)
    gate = jax.nn.sigmoid(gate_logits)
    fused = gate[:, 0:1] * pooled + gate[:, 1:2] * gcn_out
    logits = jnp.dot(fused, fc_w_ref[...], preferred_element_type=f32) + fc_b_ref[...]
    logits_ref[...] = logits.astype(logits_ref.dtype)


def _full_spec(shape):
    nd = len(shape)
    return pl.BlockSpec(shape, lambda i, nd=nd: (0,) * nd)


def forward(p, input_ids, attention_mask, adj, feat):
    Bq, Sq = input_ids.shape
    # embedding gathers stay in plain JAX (no clean rectangular-tile equivalent)
    emb = (p["word_emb"][input_ids]
           + p["pos_emb"][None, :Sq, :]
           + p["type_emb"][0][None, None, :]).reshape(Bq * Sq, H).astype(jnp.float32)
    mask = attention_mask.astype(jnp.float32)

    args = [
        emb, mask, adj.astype(jnp.float32), feat.astype(jnp.float32),
        p["emb_ln_g"], p["emb_ln_b"],
        p["wqkv"], p["bqkv"], p["wo"], p["bo"], p["ln1_g"], p["ln1_b"],
        p["w1"], p["b1"], p["w2"], p["b2"], p["ln2_g"], p["ln2_b"],
        p["pool_w"], p["pool_b"],
        p["gcn_w"], p["gcn_b"], p["gcn_fc_w"], p["gcn_fc_b"],
        p["gate_w_bert"], p["gate_w_gcn"], p["gate_b"],
        p["fc_w"], p["fc_b"],
    ]

    return pl.pallas_call(
        _forward_kernel,
        out_shape=jax.ShapeDtypeStruct((Bq, NUM_CLASSES), jnp.float32),
        grid=(1,),
        in_specs=[_full_spec(a.shape) for a in args],
        out_specs=_full_spec((Bq, NUM_CLASSES)),
        compiler_params=pltpu.CompilerParams(
            dimension_semantics=("arbitrary",)),
    )(*args)


# ----------------------------- params ---------------------------------------
def init_params(key):
    keys = iter(jax.random.split(key, 256))

    def nrm(shape, scale=0.02):
        return (scale * jax.random.normal(next(keys), shape)).astype(jnp.float32)

    wqkv = jnp.stack([
        jnp.concatenate([nrm((H, H)), nrm((H, H)), nrm((H, H))], axis=1)
        for _ in range(NLAYERS)
    ])                                                       # (L, H, 3H)
    wo = jnp.stack([nrm((H, H)) for _ in range(NLAYERS)])    # (L, H, H)
    w1 = jnp.stack([nrm((H, INTER)) for _ in range(NLAYERS)])
    w2 = jnp.stack([nrm((INTER, H)) for _ in range(NLAYERS)])

    return dict(
        word_emb=nrm((VOCAB, H)),
        pos_emb=nrm((MAXPOS, H)),
        type_emb=nrm((2, H)),
        emb_ln_g=jnp.ones((1, H), jnp.float32),
        emb_ln_b=jnp.zeros((1, H), jnp.float32),
        # stacked per-layer encoder weights (kept VMEM-resident in the kernel)
        wqkv=wqkv,
        bqkv=jnp.zeros((NLAYERS, 1, 3 * H), jnp.float32),
        wo=wo,
        bo=jnp.zeros((NLAYERS, 1, H), jnp.float32),
        ln1_g=jnp.ones((NLAYERS, 1, H), jnp.float32),
        ln1_b=jnp.zeros((NLAYERS, 1, H), jnp.float32),
        w1=w1,
        b1=jnp.zeros((NLAYERS, 1, INTER), jnp.float32),
        w2=w2,
        b2=jnp.zeros((NLAYERS, 1, H), jnp.float32),
        ln2_g=jnp.ones((NLAYERS, 1, H), jnp.float32),
        ln2_b=jnp.zeros((NLAYERS, 1, H), jnp.float32),
        pool_w=nrm((H, H)),
        pool_b=jnp.zeros((1, H), jnp.float32),
        gcn_w=nrm((GCN_IN, GCN_HID), scale=0.1),
        gcn_b=jnp.zeros((1, GCN_HID), jnp.float32),
        gcn_fc_w=nrm((GCN_HID, H), scale=0.1),
        gcn_fc_b=jnp.zeros((1, H), jnp.float32),
        # gating_layer weight (2H, 2) split into bert-half / gcn-half to avoid
        # an in-kernel concat: [bert, gcn] @ Wg == bert @ Wg_b + gcn @ Wg_g
        gate_w_bert=nrm((H, 2), scale=0.1),
        gate_w_gcn=nrm((H, 2), scale=0.1),
        gate_b=jnp.zeros((1, 2), jnp.float32),
        fc_w=nrm((H, NUM_CLASSES), scale=0.1),
        fc_b=jnp.zeros((1, NUM_CLASSES), jnp.float32),
    )


# ----------------------------- main ------------------------------------------
if __name__ == "__main__":
    root = jax.random.PRNGKey(0)
    pkey, dkey = jax.random.split(root)
    params = init_params(pkey)

    input_ids = jax.random.randint(jax.random.fold_in(dkey, 0), (B, S), 0, VOCAB)
    attention_mask = jnp.ones((B, S), jnp.int32)

    # synthetic graph: symmetric adjacency without self loops + node features
    a = jax.random.bernoulli(jax.random.fold_in(dkey, 1), 0.4,
                             (N_NODES, N_NODES)).astype(jnp.float32)
    adj = jnp.maximum(a, a.T) * (1.0 - jnp.eye(N_NODES, dtype=jnp.float32))
    feat = jax.random.normal(jax.random.fold_in(dkey, 2),
                             (N_NODES, GCN_IN)).astype(jnp.float32)

    fwd = jax.jit(forward)
    logits = fwd(params, input_ids, attention_mask, adj, feat)
    jax.block_until_ready(logits)
    assert logits.shape == (B, NUM_CLASSES)
    print("KERNEL_OK")
</pallas_src>

<mosaic_0001>
module attributes {stable_mosaic.version = 11 : i64} {
  func.func @_forward_kernel(%arg0: i32, %arg1: memref<16x32xf32, #tpu.memory_space<vmem>>, %arg2: memref<2x8xf32, #tpu.memory_space<vmem>>, %arg3: memref<6x6xf32, #tpu.memory_space<vmem>>, %arg4: memref<6x32xf32, #tpu.memory_space<vmem>>, %arg5: memref<1x32xf32, #tpu.memory_space<vmem>>, %arg6: memref<1x32xf32, #tpu.memory_space<vmem>>, %arg7: memref<2x32x96xf32, #tpu.memory_space<vmem>>, %arg8: memref<2x1x96xf32, #tpu.memory_space<vmem>>, %arg9: memref<2x32x32xf32, #tpu.memory_space<vmem>>, %arg10: memref<2x1x32xf32, #tpu.memory_space<vmem>>, %arg11: memref<2x1x32xf32, #tpu.memory_space<vmem>>, %arg12: memref<2x1x32xf32, #tpu.memory_space<vmem>>, %arg13: memref<2x32x64xf32, #tpu.memory_space<vmem>>, %arg14: memref<2x1x64xf32, #tpu.memory_space<vmem>>, %arg15: memref<2x64x32xf32, #tpu.memory_space<vmem>>, %arg16: memref<2x1x32xf32, #tpu.memory_space<vmem>>, %arg17: memref<2x1x32xf32, #tpu.memory_space<vmem>>, %arg18: memref<2x1x32xf32, #tpu.memory_space<vmem>>, %arg19: memref<32x32xf32, #tpu.memory_space<vmem>>, %arg20: memref<1x32xf32, #tpu.memory_space<vmem>>, %arg21: memref<32x16xf32, #tpu.memory_space<vmem>>, %arg22: memref<1x16xf32, #tpu.memory_space<vmem>>, %arg23: memref<16x32xf32, #tpu.memory_space<vmem>>, %arg24: memref<1x32xf32, #tpu.memory_space<vmem>>, %arg25: memref<32x2xf32, #tpu.memory_space<vmem>>, %arg26: memref<32x2xf32, #tpu.memory_space<vmem>>, %arg27: memref<1x2xf32, #tpu.memory_space<vmem>>, %arg28: memref<32x3xf32, #tpu.memory_space<vmem>>, %arg29: memref<1x3xf32, #tpu.memory_space<vmem>>, %arg30: memref<2x3xf32, #tpu.memory_space<vmem>>) attributes {dimension_semantics = [#tpu.dimension_semantics<arbitrary>], iteration_bounds = array<i64: 1>, scalar_prefetch = 0 : i64, scratch_operands = 0 : i64, tpu.core_type = #tpu.core_type<tc>, window_params = [{pipeline_mode = #tpu.pipeline_mode<synchronous>, transform_indices = @transform_0, window_bounds = array<i64: 16, 32>}, {pipeline_mode = #tpu.pipeline_mode<synchronous>, transform_indices = @transform_1, window_bounds = array<i64: 2, 8>}, {pipeline_mode = #tpu.pipeline_mode<synchronous>, transform_indices = @transform_2, window_bounds = array<i64: 6, 6>}, {pipeline_mode = #tpu.pipeline_mode<synchronous>, transform_indices = @transform_3, window_bounds = array<i64: 6, 32>}, {pipeline_mode = #tpu.pipeline_mode<synchronous>, transform_indices = @transform_4, window_bounds = array<i64: 1, 32>}, {pipeline_mode = #tpu.pipeline_mode<synchronous>, transform_indices = @transform_5, window_bounds = array<i64: 1, 32>}, {pipeline_mode = #tpu.pipeline_mode<synchronous>, transform_indices = @transform_6, window_bounds = array<i64: 2, 32, 96>}, {pipeline_mode = #tpu.pipeline_mode<synchronous>, transform_indices = @transform_7, window_bounds = array<i64: 2, 1, 96>}, {pipeline_mode = #tpu.pipeline_mode<synchronous>, transform_indices = @transform_8, window_bounds = array<i64: 2, 32, 32>}, {pipeline_mode = #tpu.pipeline_mode<synchronous>, transform_indices = @transform_9, window_bounds = array<i64: 2, 1, 32>}, {pipeline_mode = #tpu.pipeline_mode<synchronous>, transform_indices = @transform_10, window_bounds = array<i64: 2, 1, 32>}, {pipeline_mode = #tpu.pipeline_mode<synchronous>, transform_indices = @transform_11, window_bounds = array<i64: 2, 1, 32>}, {pipeline_mode = #tpu.pipeline_mode<synchronous>, transform_indices = @transform_12, window_bounds = array<i64: 2, 32, 64>}, {pipeline_mode = #tpu.pipeline_mode<synchronous>, transform_indices = @transform_13, window_bounds = array<i64: 2, 1, 64>}, {pipeline_mode = #tpu.pipeline_mode<synchronous>, transform_indices = @transform_14, window_bounds = array<i64: 2, 64, 32>}, {pipeline_mode = #tpu.pipeline_mode<synchronous>, transform_indices = @transform_15, window_bounds = array<i64: 2, 1, 32>}, {pipeline_mode = #tpu.pipeline_mode<synchronous>, transform_indices = @transform_16, window_bounds = array<i64: 2, 1, 32>}, {pipeline_mode = #tpu.pipeline_mode<synchronous>, transform_indices = @transform_17, window_bounds = array<i64: 2, 1, 32>}, {pipeline_mode = #tpu.pipeline_mode<synchronous>, transform_indices = @transform_18, window_bounds = array<i64: 32, 32>}, {pipeline_mode = #tpu.pipeline_mode<synchronous>, transform_indices = @transform_19, window_bounds = array<i64: 1, 32>}, {pipeline_mode = #tpu.pipeline_mode<synchronous>, transform_indices = @transform_20, window_bounds = array<i64: 32, 16>}, {pipeline_mode = #tpu.pipeline_mode<synchronous>, transform_indices = @transform_21, window_bounds = array<i64: 1, 16>}, {pipeline_mode = #tpu.pipeline_mode<synchronous>, transform_indices = @transform_22, window_bounds = array<i64: 16, 32>}, {pipeline_mode = #tpu.pipeline_mode<synchronous>, transform_indices = @transform_23, window_bounds = array<i64: 1, 32>}, {pipeline_mode = #tpu.pipeline_mode<synchronous>, transform_indices = @transform_24, window_bounds = array<i64: 32, 2>}, {pipeline_mode = #tpu.pipeline_mode<synchronous>, transform_indices = @transform_25, window_bounds = array<i64: 32, 2>}, {pipeline_mode = #tpu.pipeline_mode<synchronous>, transform_indices = @transform_26, window_bounds = array<i64: 1, 2>}, {pipeline_mode = #tpu.pipeline_mode<synchronous>, transform_indices = @transform_27, window_bounds = array<i64: 32, 3>}, {pipeline_mode = #tpu.pipeline_mode<synchronous>, transform_indices = @transform_28, window_bounds = array<i64: 1, 3>}, {pipeline_mode = #tpu.pipeline_mode<synchronous>, transform_indices = @transform_29, window_bounds = array<i64: 2, 3>}]} {
    %c0 = arith.constant 0 : index
    %c0_0 = arith.constant 0 : index
    %0 = vector.load %arg1[%c0, %c0_0] : memref<16x32xf32, #tpu.memory_space<vmem>>, vector<16x32xf32>
    %c0_1 = arith.constant 0 : index
    %c0_2 = arith.constant 0 : index
    %1 = vector.load %arg5[%c0_1, %c0_2] : memref<1x32xf32, #tpu.memory_space<vmem>>, vector<1x32xf32>
    %c0_3 = arith.constant 0 : index
    %c0_4 = arith.constant 0 : index
    %2 = vector.load %arg6[%c0_3, %c0_4] : memref<1x32xf32, #tpu.memory_space<vmem>>, vector<1x32xf32>
    %cst = arith.constant dense<0.000000e+00> : vector<16xf32>
    %3 = vector.multi_reduction <add>, %0, %cst [1] : vector<16x32xf32> to vector<16xf32>
    %4 = vector.shape_cast %3 : vector<16xf32> to vector<16x1xf32>
    %cst_5 = arith.constant 3.200000e+01 : f32
    %5 = vector.broadcast %cst_5 : f32 to vector<16x1xf32>
    %6 = arith.divf %4, %5 : vector<16x1xf32>
    %7 = vector.broadcast %6 : vector<16x1xf32> to vector<16x32xf32>
    %8 = arith.subf %0, %7 : vector<16x32xf32>
    %9 = arith.mulf %8, %8 : vector<16x32xf32>
    %cst_6 = arith.constant dense<0.000000e+00> : vector<16xf32>
    %10 = vector.multi_reduction <add>, %9, %cst_6 [1] : vector<16x32xf32> to vector<16xf32>
    %11 = vector.shape_cast %10 : vector<16xf32> to vector<16x1xf32>
    %cst_7 = arith.constant 3.200000e+01 : f32
    %12 = vector.broadcast %cst_7 : f32 to vector<16x1xf32>
    %13 = arith.divf %11, %12 : vector<16x1xf32>
    %14 = vector.broadcast %6 : vector<16x1xf32> to vector<16x32xf32>
    %15 = arith.subf %0, %14 : vector<16x32xf32>
    %cst_8 = arith.constant 9.99999996E-13 : f32
    %16 = vector.broadcast %cst_8 : f32 to vector<16x1xf32>
    %17 = arith.addf %13, %16 : vector<16x1xf32>
    %18 = math.rsqrt %17 : vector<16x1xf32>
    %19 = vector.broadcast %18 : vector<16x1xf32> to vector<16x32xf32>
    %20 = arith.mulf %15, %19 : vector<16x32xf32>
    %21 = vector.broadcast %1 : vector<1x32xf32> to vector<16x32xf32>
    %22 = arith.mulf %20, %21 : vector<16x32xf32>
    %23 = vector.broadcast %2 : vector<1x32xf32> to vector<16x32xf32>
    %24 = arith.addf %22, %23 : vector<16x32xf32>
    %c0_9 = arith.constant 0 : index
    %c0_10 = arith.constant 0 : index
    %25 = vector.load %arg2[%c0_9, %c0_10] : memref<2x8xf32, #tpu.memory_space<vmem>>, vector<2x8xf32>
    %cst_11 = arith.constant 1.000000e+00 : f32
    %26 = vector.broadcast %cst_11 : f32 to vector<2x8xf32>
    %27 = arith.subf %26, %25 : vector<2x8xf32>
    %cst_12 = arith.constant -1.000000e+04 : f32
    %28 = vector.broadcast %cst_12 : f32 to vector<2x8xf32>
    %29 = arith.mulf %27, %28 : vector<2x8xf32>
    %30 = vector.shape_cast %29 : vector<2x8xf32> to vector<2x1x8xf32>
    %c0_13 = arith.constant 0 : index
    %c0_14 = arith.constant 0 : index
    %c0_15 = arith.constant 0 : index
    %31 = vector.load %arg7[%c0_13, %c0_14, %c0_15] : memref<2x32x96xf32, #tpu.memory_space<vmem>>, vector<1x32x96xf32>
    %32 = vector.shape_cast %31 : vector<1x32x96xf32> to vector<32x96xf32>
    %cst_16 = arith.constant dense<0.000000e+00> : vector<16x96xf32>
    %33 = tpu.matmul %24, %32, %cst_16 {dimension_numbers = #tpu.dot_dimension_numbers<[1], [0], [0], [1], [0, 0, 1, 1], [], []>} : vector<16x32xf32>, vector<32x96xf32>, vector<16x96xf32> -> vector<16x96xf32>
    %c0_17 = arith.constant 0 : index
    %c0_18 = arith.constant 0 : index
    %c0_19 = arith.constant 0 : index
    %34 = vector.load %arg8[%c0_17, %c0_18, %c0_19] : memref<2x1x96xf32, #tpu.memory_space<vmem>>, vector<1x1x96xf32>
    %35 = vector.shape_cast %34 : vector<1x1x96xf32> to vector<1x96xf32>
    %36 = vector.broadcast %35 : vector<1x96xf32> to vector<16x96xf32>
    %37 = arith.addf %33, %36 : vector<16x96xf32>
    %c0_20 = arith.constant 0 : index
    %c0_21 = arith.constant 0 : index
    %c0_22 = arith.constant 0 : index
    %38 = vector.load %arg10[%c0_20, %c0_21, %c0_22] : memref<2x1x32xf32, #tpu.memory_space<vmem>>, vector<1x1x32xf32>
    %39 = vector.shape_cast %38 : vector<1x1x32xf32> to vector<1x32xf32>
    %40 = vector.shape_cast %39 : vector<1x32xf32> to vector<1x32xf32>
    %41 = vector.broadcast %40 : vector<1x32xf32> to vector<16x32xf32>
    %42 = vector.extract_strided_slice %37 {offsets = [0, 0], sizes = [16, 16], strides = [1, 1]} : vector<16x96xf32> to vector<16x16xf32>
    %43 = vector.shape_cast %42 : vector<16x16xf32> to vector<2x8x16xf32>
    %44 = vector.extract_strided_slice %37 {offsets = [0, 32], sizes = [16, 16], strides = [1, 1]} : vector<16x96xf32> to vector<16x16xf32>
    %45 = vector.shape_cast %44 : vector<16x16xf32> to vector<2x8x16xf32>
    %46 = vector.extract_strided_slice %37 {offsets = [0, 64], sizes = [16, 16], strides = [1, 1]} : vector<16x96xf32> to vector<16x16xf32>
    %47 = vector.shape_cast %46 : vector<16x16xf32> to vector<2x8x16xf32>
    "tpu.trace_start"() <{level = 10 : i32, message = "bqd,bkd->bqk"}> : () -> ()
    %cst_23 = arith.constant dense<0.000000e+00> : vector<2x8x8xf32>
    %48 = tpu.matmul %43, %45, %cst_23 {dimension_numbers = #tpu.dot_dimension_numbers<[2], [2], [1], [1], [0, 0, 0, 1, 1, 1], [0], [0]>} : vector<2x8x16xf32>, vector<2x8x16xf32>, vector<2x8x8xf32> -> vector<2x8x8xf32>
    "tpu.trace_stop"() : () -> ()
    %cst_24 = arith.constant 2.500000e-01 : f32
    %49 = vector.broadcast %cst_24 : f32 to vector<2x8x8xf32>
    %50 = arith.mulf %48, %49 : vector<2x8x8xf32>
    %51 = vector.broadcast %30 : vector<2x1x8xf32> to vector<2x8x8xf32>
    %52 = arith.addf %50, %51 : vector<2x8x8xf32>
    %cst_25 = arith.constant dense<0xFF800000> : vector<2x8xf32>
    %53 = vector.multi_reduction <maximumf>, %52, %cst_25 [2] : vector<2x8x8xf32> to vector<2x8xf32>
    %54 = vector.shape_cast %53 : vector<2x8xf32> to vector<2x8x1xf32>
    %55 = vector.broadcast %54 : vector<2x8x1xf32> to vector<2x8x8xf32>
    %56 = arith.subf %52, %55 : vector<2x8x8xf32>
    %57 = math.exp %56 : vector<2x8x8xf32>
    %cst_26 = arith.constant dense<0.000000e+00> : vector<2x8xf32>
    %58 = vector.multi_reduction <add>, %57, %cst_26 [2] : vector<2x8x8xf32> to vector<2x8xf32>
    %59 = vector.shape_cast %58 : vector<2x8xf32> to vector<2x8x1xf32>
    %60 = tpu.reciprocal %59 {approx = true} : vector<2x8x1xf32> -> vector<2x8x1xf32>
    %61 = vector.broadcast %60 : vector<2x8x1xf32> to vector<2x8x8xf32>
    %62 = arith.mulf %57, %61 : vector<2x8x8xf32>
    "tpu.trace_start"() <{level = 10 : i32, message = "bqk,bkd->bqd"}> : () -> ()
    %cst_27 = arith.constant dense<0.000000e+00> : vector<2x8x16xf32>
    %63 = tpu.matmul %62, %47, %cst_27 {dimension_numbers = #tpu.dot_dimension_numbers<[2], [1], [1], [2], [0, 0, 0, 1, 1, 2], [0], [0]>} : vector<2x8x8xf32>, vector<2x8x16xf32>, vector<2x8x16xf32> -> vector<2x8x16xf32>
    "tpu.trace_stop"() : () -> ()
    %64 = vector.shape_cast %63 : vector<2x8x16xf32> to vector<16x16xf32>
    %c0_28 = arith.constant 0 : index
    %c0_29 = arith.constant 0 : index
    %c0_30 = arith.constant 0 : index
    %65 = vector.load %arg9[%c0_28, %c0_29, %c0_30] : memref<2x32x32xf32, #tpu.memory_space<vmem>>, vector<1x16x32xf32>
    %66 = vector.shape_cast %65 : vector<1x16x32xf32> to vector<16x32xf32>
    %cst_31 = arith.constant dense<0.000000e+00> : vector<16x32xf32>
    %67 = tpu.matmul %64, %66, %cst_31 {dimension_numbers = #tpu.dot_dimension_numbers<[1], [0], [0], [1], [0, 0, 1, 1], [], []>} : vector<16x16xf32>, vector<16x32xf32>, vector<16x32xf32> -> vector<16x32xf32>
    %68 = arith.addf %41, %67 : vector<16x32xf32>
    %69 = vector.extract_strided_slice %37 {offsets = [0, 16], sizes = [16, 16], strides = [1, 1]} : vector<16x96xf32> to vector<16x16xf32>
    %70 = vector.shape_cast %69 : vector<16x16xf32> to vector<2x8x16xf32>
    %71 = vector.extract_strided_slice %37 {offsets = [0, 48], sizes = [16, 16], strides = [1, 1]} : vector<16x96xf32> to vector<16x16xf32>
    %72 = vector.shape_cast %71 : vector<16x16xf32> to vector<2x8x16xf32>
    %73 = vector.extract_strided_slice %37 {offsets = [0, 80], sizes = [16, 16], strides = [1, 1]} : vector<16x96xf32> to vector<16x16xf32>
    %74 = vector.shape_cast %73 : vector<16x16xf32> to vector<2x8x16xf32>
    "tpu.trace_start"() <{level = 10 : i32, message = "bqd,bkd->bqk"}> : () -> ()
    %cst_32 = arith.constant dense<0.000000e+00> : vector<2x8x8xf32>
    %75 = tpu.matmul %70, %72, %cst_32 {dimension_numbers = #tpu.dot_dimension_numbers<[2], [2], [1], [1], [0, 0, 0, 1, 1, 1], [0], [0]>} : vector<2x8x16xf32>, vector<2x8x16xf32>, vector<2x8x8xf32> -> vector<2x8x8xf32>
    "tpu.trace_stop"() : () -> ()
    %cst_33 = arith.constant 2.500000e-01 : f32
    %76 = vector.broadcast %cst_33 : f32 to vector<2x8x8xf32>
    %77 = arith.mulf %75, %76 : vector<2x8x8xf32>
    %78 = vector.broadcast %30 : vector<2x1x8xf32> to vector<2x8x8xf32>
    %79 = arith.addf %77, %78 : vector<2x8x8xf32>
    %cst_34 = arith.constant dense<0xFF800000> : vector<2x8xf32>
    %80 = vector.multi_reduction <maximumf>, %79, %cst_34 [2] : vector<2x8x8xf32> to vector<2x8xf32>
    %81 = vector.shape_cast %80 : vector<2x8xf32> to vector<2x8x1xf32>
    %82 = vector.broadcast %81 : vector<2x8x1xf32> to vector<2x8x8xf32>
    %83 = arith.subf %79, %82 : vector<2x8x8xf32>
    %84 = math.exp %83 : vector<2x8x8xf32>
    %cst_35 = arith.constant dense<0.000000e+00> : vector<2x8xf32>
    %85 = vector.multi_reduction <add>, %84, %cst_35 [2] : vector<2x8x8xf32> to vector<2x8xf32>
    %86 = vector.shape_cast %85 : vector<2x8xf32> to vector<2x8x1xf32>
    %87 = tpu.reciprocal %86 {approx = true} : vector<2x8x1xf32> -> vector<2x8x1xf32>
    %88 = vector.broadcast %87 : vector<2x8x1xf32> to vector<2x8x8xf32>
    %89 = arith.mulf %84, %88 : vector<2x8x8xf32>
    "tpu.trace_start"() <{level = 10 : i32, message = "bqk,bkd->bqd"}> : () -> ()
    %cst_36 = arith.constant dense<0.000000e+00> : vector<2x8x16xf32>
    %90 = tpu.matmul %89, %74, %cst_36 {dimension_numbers = #tpu.dot_dimension_numbers<[2], [1], [1], [2], [0, 0, 0, 1, 1, 2], [0], [0]>} : vector<2x8x8xf32>, vector<2x8x16xf32>, vector<2x8x16xf32> -> vector<2x8x16xf32>
    "tpu.trace_stop"() : () -> ()
    %91 = vector.shape_cast %90 : vector<2x8x16xf32> to vector<16x16xf32>
    %c0_37 = arith.constant 0 : index
    %c16 = arith.constant 16 : index
    %c0_38 = arith.constant 0 : index
    %92 = vector.load %arg9[%c0_37, %c16, %c0_38] : memref<2x32x32xf32, #tpu.memory_space<vmem>>, vector<1x16x32xf32>
    %93 = vector.shape_cast %92 : vector<1x16x32xf32> to vector<16x32xf32>
    %cst_39 = arith.constant dense<0.000000e+00> : vector<16x32xf32>
    %94 = tpu.matmul %91, %93, %cst_39 {dimension_numbers = #tpu.dot_dimension_numbers<[1], [0], [0], [1], [0, 0, 1, 1], [], []>} : vector<16x16xf32>, vector<16x32xf32>, vector<16x32xf32> -> vector<16x32xf32>
    %95 = arith.addf %68, %94 : vector<16x32xf32>
    %96 = arith.addf %95, %24 : vector<16x32xf32>
    %c0_40 = arith.constant 0 : index
    %c0_41 = arith.constant 0 : index
    %c0_42 = arith.constant 0 : index
    %97 = vector.load %arg11[%c0_40, %c0_41, %c0_42] : memref<2x1x32xf32, #tpu.memory_space<vmem>>, vector<1x1x32xf32>
    %98 = vector.shape_cast %97 : vector<1x1x32xf32> to vector<1x32xf32>
    %c0_43 = arith.constant 0 : index
    %c0_44 = arith.constant 0 : index
    %c0_45 = arith.constant 0 : index
    %99 = vector.load %arg12[%c0_43, %c0_44, %c0_45] : memref<2x1x32xf32, #tpu.memory_space<vmem>>, vector<1x1x32xf32>
    %100 = vector.shape_cast %99 : vector<1x1x32xf32> to vector<1x32xf32>
    %cst_46 = arith.constant dense<0.000000e+00> : vector<16xf32>
    %101 = vector.multi_reduction <add>, %96, %cst_46 [1] : vector<16x32xf32> to vector<16xf32>
    %102 = vector.shape_cast %101 : vector<16xf32> to vector<16x1xf32>
    %cst_47 = arith.constant 3.200000e+01 : f32
    %103 = vector.broadcast %cst_47 : f32 to vector<16x1xf32>
    %104 = arith.divf %102, %103 : vector<16x1xf32>
    %105 = vector.broadcast %104 : vector<16x1xf32> to vector<16x32xf32>
    %106 = arith.subf %96, %105 : vector<16x32xf32>
    %107 = arith.mulf %106, %106 : vector<16x32xf32>
    %cst_48 = arith.constant dense<0.000000e+00> : vector<16xf32>
    %108 = vector.multi_reduction <add>, %107, %cst_48 [1] : vector<16x32xf32> to vector<16xf32>
    %109 = vector.shape_cast %108 : vector<16xf32> to vector<16x1xf32>
    %cst_49 = arith.constant 3.200000e+01 : f32
    %110 = vector.broadcast %cst_49 : f32 to vector<16x1xf32>
    %111 = arith.divf %109, %110 : vector<16x1xf32>
    %112 = vector.broadcast %104 : vector<16x1xf32> to vector<16x32xf32>
    %113 = arith.subf %96, %112 : vector<16x32xf32>
    %cst_50 = arith.constant 9.99999996E-13 : f32
    %114 = vector.broadcast %cst_50 : f32 to vector<16x1xf32>
    %115 = arith.addf %111, %114 : vector<16x1xf32>
    %116 = math.rsqrt %115 : vector<16x1xf32>
    %117 = vector.broadcast %116 : vector<16x1xf32> to vector<16x32xf32>
    %118 = arith.mulf %113, %117 : vector<16x32xf32>
    %119 = vector.broadcast %98 : vector<1x32xf32> to vector<16x32xf32>
    %120 = arith.mulf %118, %119 : vector<16x32xf32>
    %121 = vector.broadcast %100 : vector<1x32xf32> to vector<16x32xf32>
    %122 = arith.addf %120, %121 : vector<16x32xf32>
    %c0_51 = arith.constant 0 : index
    %c0_52 = arith.constant 0 : index
    %c0_53 = arith.constant 0 : index
    %123 = vector.load %arg13[%c0_51, %c0_52, %c0_53] : memref<2x32x64xf32, #tpu.memory_space<vmem>>, vector<1x32x64xf32>
    %124 = vector.shape_cast %123 : vector<1x32x64xf32> to vector<32x64xf32>
    %cst_54 = arith.constant dense<0.000000e+00> : vector<16x64xf32>
    %125 = tpu.matmul %122, %124, %cst_54 {dimension_numbers = #tpu.dot_dimension_numbers<[1], [0], [0], [1], [0, 0, 1, 1], [], []>} : vector<16x32xf32>, vector<32x64xf32>, vector<16x64xf32> -> vector<16x64xf32>
    %c0_55 = arith.constant 0 : index
    %c0_56 = arith.constant 0 : index
    %c0_57 = arith.constant 0 : index
    %126 = vector.load %arg14[%c0_55, %c0_56, %c0_57] : memref<2x1x64xf32, #tpu.memory_space<vmem>>, vector<1x1x64xf32>
    %127 = vector.shape_cast %126 : vector<1x1x64xf32> to vector<1x64xf32>
    %128 = vector.broadcast %127 : vector<1x64xf32> to vector<16x64xf32>
    %129 = arith.addf %125, %128 : vector<16x64xf32>
    %130 = arith.mulf %129, %129 : vector<16x64xf32>
    %131 = arith.mulf %129, %130 : vector<16x64xf32>
    %cst_58 = arith.constant 4.471500e-02 : f32
    %132 = vector.broadcast %cst_58 : f32 to vector<16x64xf32>
    %133 = arith.mulf %132, %131 : vector<16x64xf32>
    %134 = arith.addf %129, %133 : vector<16x64xf32>
    %cst_59 = arith.constant 0.797884583 : f32
    %135 = vector.broadcast %cst_59 : f32 to vector<16x64xf32>
    %136 = arith.mulf %135, %134 : vector<16x64xf32>
    %137 = math.tanh %136 : vector<16x64xf32>
    %cst_60 = arith.constant 1.000000e+00 : f32
    %138 = vector.broadcast %cst_60 : f32 to vector<16x64xf32>
    %139 = arith.addf %138, %137 : vector<16x64xf32>
    %cst_61 = arith.constant 5.000000e-01 : f32
    %140 = vector.broadcast %cst_61 : f32 to vector<16x64xf32>
    %141 = arith.mulf %140, %139 : vector<16x64xf32>
    %142 = arith.mulf %129, %141 : vector<16x64xf32>
    %c0_62 = arith.constant 0 : index
    %c0_63 = arith.constant 0 : index
    %c0_64 = arith.constant 0 : index
    %143 = vector.load %arg15[%c0_62, %c0_63, %c0_64] : memref<2x64x32xf32, #tpu.memory_space<vmem>>, vector<1x64x32xf32>
    %144 = vector.shape_cast %143 : vector<1x64x32xf32> to vector<64x32xf32>
    %cst_65 = arith.constant dense<0.000000e+00> : vector<16x32xf32>
    %145 = tpu.matmul %142, %144, %cst_65 {dimension_numbers = #tpu.dot_dimension_numbers<[1], [0], [0], [1], [0, 0, 1, 1], [], []>} : vector<16x64xf32>, vector<64x32xf32>, vector<16x32xf32> -> vector<16x32xf32>
    %c0_66 = arith.constant 0 : index
    %c0_67 = arith.constant 0 : index
    %c0_68 = arith.constant 0 : index
    %146 = vector.load %arg16[%c0_66, %c0_67, %c0_68] : memref<2x1x32xf32, #tpu.memory_space<vmem>>, vector<1x1x32xf32>
    %147 = vector.shape_cast %146 : vector<1x1x32xf32> to vector<1x32xf32>
    %148 = vector.broadcast %147 : vector<1x32xf32> to vector<16x32xf32>
    %149 = arith.addf %145, %148 : vector<16x32xf32>
    %150 = arith.addf %149, %122 : vector<16x32xf32>
    %c0_69 = arith.constant 0 : index
    %c0_70 = arith.constant 0 : index
    %c0_71 = arith.constant 0 : index
    %151 = vector.load %arg17[%c0_69, %c0_70, %c0_71] : memref<2x1x32xf32, #tpu.memory_space<vmem>>, vector<1x1x32xf32>
    %152 = vector.shape_cast %151 : vector<1x1x32xf32> to vector<1x32xf32>
    %c0_72 = arith.constant 0 : index
    %c0_73 = arith.constant 0 : index
    %c0_74 = arith.constant 0 : index
    %153 = vector.load %arg18[%c0_72, %c0_73, %c0_74] : memref<2x1x32xf32, #tpu.memory_space<vmem>>, vector<1x1x32xf32>
    %154 = vector.shape_cast %153 : vector<1x1x32xf32> to vector<1x32xf32>
    %cst_75 = arith.constant dense<0.000000e+00> : vector<16xf32>
    %155 = vector.multi_reduction <add>, %150, %cst_75 [1] : vector<16x32xf32> to vector<16xf32>
    %156 = vector.shape_cast %155 : vector<16xf32> to vector<16x1xf32>
    %cst_76 = arith.constant 3.200000e+01 : f32
    %157 = vector.broadcast %cst_76 : f32 to vector<16x1xf32>
    %158 = arith.divf %156, %157 : vector<16x1xf32>
    %159 = vector.broadcast %158 : vector<16x1xf32> to vector<16x32xf32>
    %160 = arith.subf %150, %159 : vector<16x32xf32>
    %161 = arith.mulf %160, %160 : vector<16x32xf32>
    %cst_77 = arith.constant dense<0.000000e+00> : vector<16xf32>
    %162 = vector.multi_reduction <add>, %161, %cst_77 [1] : vector<16x32xf32> to vector<16xf32>
    %163 = vector.shape_cast %162 : vector<16xf32> to vector<16x1xf32>
    %cst_78 = arith.constant 3.200000e+01 : f32
    %164 = vector.broadcast %cst_78 : f32 to vector<16x1xf32>
    %165 = arith.divf %163, %164 : vector<16x1xf32>
    %166 = vector.broadcast %158 : vector<16x1xf32> to vector<16x32xf32>
    %167 = arith.subf %150, %166 : vector<16x32xf32>
    %cst_79 = arith.constant 9.99999996E-13 : f32
    %168 = vector.broadcast %cst_79 : f32 to vector<16x1xf32>
    %169 = arith.addf %165, %168 : vector<16x1xf32>
    %170 = math.rsqrt %169 : vector<16x1xf32>
    %171 = vector.broadcast %170 : vector<16x1xf32> to vector<16x32xf32>
    %172 = arith.mulf %167, %171 : vector<16x32xf32>
    %173 = vector.broadcast %152 : vector<1x32xf32> to vector<16x32xf32>
    %174 = arith.mulf %172, %173 : vector<16x32xf32>
    %175 = vector.broadcast %154 : vector<1x32xf32> to vector<16x32xf32>
    %176 = arith.addf %174, %175 : vector<16x32xf32>
    %c1 = arith.constant 1 : index
    %c0_80 = arith.constant 0 : index
    %c0_81 = arith.constant 0 : index
    %177 = vector.load %arg7[%c1, %c0_80, %c0_81] : memref<2x32x96xf32, #tpu.memory_space<vmem>>, vector<1x32x96xf32>
    %178 = vector.shape_cast %177 : vector<1x32x96xf32> to vector<32x96xf32>
    %cst_82 = arith.constant dense<0.000000e+00> : vector<16x96xf32>
    %179 = tpu.matmul %176, %178, %cst_82 {dimension_numbers = #tpu.dot_dimension_numbers<[1], [0], [0], [1], [0, 0, 1, 1], [], []>} : vector<16x32xf32>, vector<32x96xf32>, vector<16x96xf32> -> vector<16x96xf32>
    %c1_83 = arith.constant 1 : index
    %c0_84 = arith.constant 0 : index
    %c0_85 = arith.constant 0 : index
    %180 = vector.load %arg8[%c1_83, %c0_84, %c0_85] : memref<2x1x96xf32, #tpu.memory_space<vmem>>, vector<1x1x96xf32>
    %181 = vector.shape_cast %180 : vector<1x1x96xf32> to vector<1x96xf32>
    %182 = vector.broadcast %181 : vector<1x96xf32> to vector<16x96xf32>
    %183 = arith.addf %179, %182 : vector<16x96xf32>
    %c1_86 = arith.constant 1 : index
    %c0_87 = arith.constant 0 : index
    %c0_88 = arith.constant 0 : index
    %184 = vector.load %arg10[%c1_86, %c0_87, %c0_88] : memref<2x1x32xf32, #tpu.memory_space<vmem>>, vector<1x1x32xf32>
    %185 = vector.shape_cast %184 : vector<1x1x32xf32> to vector<1x32xf32>
    %186 = vector.shape_cast %185 : vector<1x32xf32> to vector<1x32xf32>
    %187 = vector.broadcast %186 : vector<1x32xf32> to vector<16x32xf32>
    %188 = vector.extract_strided_slice %183 {offsets = [0, 0], sizes = [16, 16], strides = [1, 1]} : vector<16x96xf32> to vector<16x16xf32>
    %189 = vector.shape_cast %188 : vector<16x16xf32> to vector<2x8x16xf32>
    %190 = vector.extract_strided_slice %183 {offsets = [0, 32], sizes = [16, 16], strides = [1, 1]} : vector<16x96xf32> to vector<16x16xf32>
    %191 = vector.shape_cast %190 : vector<16x16xf32> to vector<2x8x16xf32>
    %192 = vector.extract_strided_slice %183 {offsets = [0, 64], sizes = [16, 16], strides = [1, 1]} : vector<16x96xf32> to vector<16x16xf32>
    %193 = vector.shape_cast %192 : vector<16x16xf32> to vector<2x8x16xf32>
    "tpu.trace_start"() <{level = 10 : i32, message = "bqd,bkd->bqk"}> : () -> ()
    %cst_89 = arith.constant dense<0.000000e+00> : vector<2x8x8xf32>
    %194 = tpu.matmul %189, %191, %cst_89 {dimension_numbers = #tpu.dot_dimension_numbers<[2], [2], [1], [1], [0, 0, 0, 1, 1, 1], [0], [0]>} : vector<2x8x16xf32>, vector<2x8x16xf32>, vector<2x8x8xf32> -> vector<2x8x8xf32>
    "tpu.trace_stop"() : () -> ()
    %cst_90 = arith.constant 2.500000e-01 : f32
    %195 = vector.broadcast %cst_90 : f32 to vector<2x8x8xf32>
    %196 = arith.mulf %194, %195 : vector<2x8x8xf32>
    %197 = vector.broadcast %30 : vector<2x1x8xf32> to vector<2x8x8xf32>
    %198 = arith.addf %196, %197 : vector<2x8x8xf32>
    %cst_91 = arith.constant dense<0xFF800000> : vector<2x8xf32>
    %199 = vector.multi_reduction <maximumf>, %198, %cst_91 [2] : vector<2x8x8xf32> to vector<2x8xf32>
    %200 = vector.shape_cast %199 : vector<2x8xf32> to vector<2x8x1xf32>
    %201 = vector.broadcast %200 : vector<2x8x1xf32> to vector<2x8x8xf32>
    %202 = arith.subf %198, %201 : vector<2x8x8xf32>
    %203 = math.exp %202 : vector<2x8x8xf32>
    %cst_92 = arith.constant dense<0.000000e+00> : vector<2x8xf32>
    %204 = vector.multi_reduction <add>, %203, %cst_92 [2] : vector<2x8x8xf32> to vector<2x8xf32>
    %205 = vector.shape_cast %204 : vector<2x8xf32> to vector<2x8x1xf32>
    %206 = tpu.reciprocal %205 {approx = true} : vector<2x8x1xf32> -> vector<2x8x1xf32>
    %207 = vector.broadcast %206 : vector<2x8x1xf32> to vector<2x8x8xf32>
    %208 = arith.mulf %203, %207 : vector<2x8x8xf32>
    "tpu.trace_start"() <{level = 10 : i32, message = "bqk,bkd->bqd"}> : () -> ()
    %cst_93 = arith.constant dense<0.000000e+00> : vector<2x8x16xf32>
    %209 = tpu.matmul %208, %193, %cst_93 {dimension_numbers = #tpu.dot_dimension_numbers<[2], [1], [1], [2], [0, 0, 0, 1, 1, 2], [0], [0]>} : vector<2x8x8xf32>, vector<2x8x16xf32>, vector<2x8x16xf32> -> vector<2x8x16xf32>
    "tpu.trace_stop"() : () -> ()
    %210 = vector.shape_cast %209 : vector<2x8x16xf32> to vector<16x16xf32>
    %c1_94 = arith.constant 1 : index
    %c0_95 = arith.constant 0 : index
    %c0_96 = arith.constant 0 : index
    %211 = vector.load %arg9[%c1_94, %c0_95, %c0_96] : memref<2x32x32xf32, #tpu.memory_space<vmem>>, vector<1x16x32xf32>
    %212 = vector.shape_cast %211 : vector<1x16x32xf32> to vector<16x32xf32>
    %cst_97 = arith.constant dense<0.000000e+00> : vector<16x32xf32>
    %213 = tpu.matmul %210, %212, %cst_97 {dimension_numbers = #tpu.dot_dimension_numbers<[1], [0], [0], [1], [0, 0, 1, 1], [], []>} : vector<16x16xf32>, vector<16x32xf32>, vector<16x32xf32> -> vector<16x32xf32>
    %214 = arith.addf %187, %213 : vector<16x32xf32>
    %215 = vector.extract_strided_slice %183 {offsets = [0, 16], sizes = [16, 16], strides = [1, 1]} : vector<16x96xf32> to vector<16x16xf32>
    %216 = vector.shape_cast %215 : vector<16x16xf32> to vector<2x8x16xf32>
    %217 = vector.extract_strided_slice %183 {offsets = [0, 48], sizes = [16, 16], strides = [1, 1]} : vector<16x96xf32> to vector<16x16xf32>
    %218 = vector.shape_cast %217 : vector<16x16xf32> to vector<2x8x16xf32>
    %219 = vector.extract_strided_slice %183 {offsets = [0, 80], sizes = [16, 16], strides = [1, 1]} : vector<16x96xf32> to vector<16x16xf32>
    %220 = vector.shape_cast %219 : vector<16x16xf32> to vector<2x8x16xf32>
    "tpu.trace_start"() <{level = 10 : i32, message = "bqd,bkd->bqk"}> : () -> ()
    %cst_98 = arith.constant dense<0.000000e+00> : vector<2x8x8xf32>
    %221 = tpu.matmul %216, %218, %cst_98 {dimension_numbers = #tpu.dot_dimension_numbers<[2], [2], [1], [1], [0, 0, 0, 1, 1, 1], [0], [0]>} : vector<2x8x16xf32>, vector<2x8x16xf32>, vector<2x8x8xf32> -> vector<2x8x8xf32>
    "tpu.trace_stop"() : () -> ()
    %cst_99 = arith.constant 2.500000e-01 : f32
    %222 = vector.broadcast %cst_99 : f32 to vector<2x8x8xf32>
    %223 = arith.mulf %221, %222 : vector<2x8x8xf32>
    %224 = vector.broadcast %30 : vector<2x1x8xf32> to vector<2x8x8xf32>
    %225 = arith.addf %223, %224 : vector<2x8x8xf32>
    %cst_100 = arith.constant dense<0xFF800000> : vector<2x8xf32>
    %226 = vector.multi_reduction <maximumf>, %225, %cst_100 [2] : vector<2x8x8xf32> to vector<2x8xf32>
    %227 = vector.shape_cast %226 : vector<2x8xf32> to vector<2x8x1xf32>
    %228 = vector.broadcast %227 : vector<2x8x1xf32> to vector<2x8x8xf32>
    %229 = arith.subf %225, %228 : vector<2x8x8xf32>
    %230 = math.exp %229 : vector<2x8x8xf32>
    %cst_101 = arith.constant dense<0.000000e+00> : vector<2x8xf32>
    %231 = vector.multi_reduction <add>, %230, %cst_101 [2] : vector<2x8x8xf32> to vector<2x8xf32>
    %232 = vector.shape_cast %231 : vector<2x8xf32> to vector<2x8x1xf32>
    %233 = tpu.reciprocal %232 {approx = true} : vector<2x8x1xf32> -> vector<2x8x1xf32>
    %234 = vector.broadcast %233 : vector<2x8x1xf32> to vector<2x8x8xf32>
    %235 = arith.mulf %230, %234 : vector<2x8x8xf32>
    "tpu.trace_start"() <{level = 10 : i32, message = "bqk,bkd->bqd"}> : () -> ()
    %cst_102 = arith.constant dense<0.000000e+00> : vector<2x8x16xf32>
    %236 = tpu.matmul %235, %220, %cst_102 {dimension_numbers = #tpu.dot_dimension_numbers<[2], [1], [1], [2], [0, 0, 0, 1, 1, 2], [0], [0]>} : vector<2x8x8xf32>, vector<2x8x16xf32>, vector<2x8x16xf32> -> vector<2x8x16xf32>
    "tpu.trace_stop"() : () -> ()
    %237 = vector.shape_cast %236 : vector<2x8x16xf32> to vector<16x16xf32>
    %c1_103 = arith.constant 1 : index
    %c16_104 = arith.constant 16 : index
    %c0_105 = arith.constant 0 : index
    %238 = vector.load %arg9[%c1_103, %c16_104, %c0_105] : memref<2x32x32xf32, #tpu.memory_space<vmem>>, vector<1x16x32xf32>
    %239 = vector.shape_cast %238 : vector<1x16x32xf32> to vector<16x32xf32>
    %cst_106 = arith.constant dense<0.000000e+00> : vector<16x32xf32>
    %240 = tpu.matmul %237, %239, %cst_106 {dimension_numbers = #tpu.dot_dimension_numbers<[1], [0], [0], [1], [0, 0, 1, 1], [], []>} : vector<16x16xf32>, vector<16x32xf32>, vector<16x32xf32> -> vector<16x32xf32>
    %241 = arith.addf %214, %240 : vector<16x32xf32>
    %242 = arith.addf %241, %176 : vector<16x32xf32>
    %c1_107 = arith.constant 1 : index
    %c0_108 = arith.constant 0 : index
    %c0_109 = arith.constant 0 : index
    %243 = vector.load %arg11[%c1_107, %c0_108, %c0_109] : memref<2x1x32xf32, #tpu.memory_space<vmem>>, vector<1x1x32xf32>
    %244 = vector.shape_cast %243 : vector<1x1x32xf32> to vector<1x32xf32>
    %c1_110 = arith.constant 1 : index
    %c0_111 = arith.constant 0 : index
    %c0_112 = arith.constant 0 : index
    %245 = vector.load %arg12[%c1_110, %c0_111, %c0_112] : memref<2x1x32xf32, #tpu.memory_space<vmem>>, vector<1x1x32xf32>
    %246 = vector.shape_cast %245 : vector<1x1x32xf32> to vector<1x32xf32>
    %cst_113 = arith.constant dense<0.000000e+00> : vector<16xf32>
    %247 = vector.multi_reduction <add>, %242, %cst_113 [1] : vector<16x32xf32> to vector<16xf32>
    %248 = vector.shape_cast %247 : vector<16xf32> to vector<16x1xf32>
    %cst_114 = arith.constant 3.200000e+01 : f32
    %249 = vector.broadcast %cst_114 : f32 to vector<16x1xf32>
    %250 = arith.divf %248, %249 : vector<16x1xf32>
    %251 = vector.broadcast %250 : vector<16x1xf32> to vector<16x32xf32>
    %252 = arith.subf %242, %251 : vector<16x32xf32>
    %253 = arith.mulf %252, %252 : vector<16x32xf32>
    %cst_115 = arith.constant dense<0.000000e+00> : vector<16xf32>
    %254 = vector.multi_reduction <add>, %253, %cst_115 [1] : vector<16x32xf32> to vector<16xf32>
    %255 = vector.shape_cast %254 : vector<16xf32> to vector<16x1xf32>
    %cst_116 = arith.constant 3.200000e+01 : f32
    %256 = vector.broadcast %cst_116 : f32 to vector<16x1xf32>
    %257 = arith.divf %255, %256 : vector<16x1xf32>
    %258 = vector.broadcast %250 : vector<16x1xf32> to vector<16x32xf32>
    %259 = arith.subf %242, %258 : vector<16x32xf32>
    %cst_117 = arith.constant 9.99999996E-13 : f32
    %260 = vector.broadcast %cst_117 : f32 to vector<16x1xf32>
    %261 = arith.addf %257, %260 : vector<16x1xf32>
    %262 = math.rsqrt %261 : vector<16x1xf32>
    %263 = vector.broadcast %262 : vector<16x1xf32> to vector<16x32xf32>
    %264 = arith.mulf %259, %263 : vector<16x32xf32>
    %265 = vector.broadcast %244 : vector<1x32xf32> to vector<16x32xf32>
    %266 = arith.mulf %264, %265 : vector<16x32xf32>
    %267 = vector.broadcast %246 : vector<1x32xf32> to vector<16x32xf32>
    %268 = arith.addf %266, %267 : vector<16x32xf32>
    %c1_118 = arith.constant 1 : index
    %c0_119 = arith.constant 0 : index
    %c0_120 = arith.constant 0 : index
    %269 = vector.load %arg13[%c1_118, %c0_119, %c0_120] : memref<2x32x64xf32, #tpu.memory_space<vmem>>, vector<1x32x64xf32>
    %270 = vector.shape_cast %269 : vector<1x32x64xf32> to vector<32x64xf32>
    %cst_121 = arith.constant dense<0.000000e+00> : vector<16x64xf32>
    %271 = tpu.matmul %268, %270, %cst_121 {dimension_numbers = #tpu.dot_dimension_numbers<[1], [0], [0], [1], [0, 0, 1, 1], [], []>} : vector<16x32xf32>, vector<32x64xf32>, vector<16x64xf32> -> vector<16x64xf32>
    %c1_122 = arith.constant 1 : index
    %c0_123 = arith.constant 0 : index
    %c0_124 = arith.constant 0 : index
    %272 = vector.load %arg14[%c1_122, %c0_123, %c0_124] : memref<2x1x64xf32, #tpu.memory_space<vmem>>, vector<1x1x64xf32>
    %273 = vector.shape_cast %272 : vector<1x1x64xf32> to vector<1x64xf32>
    %274 = vector.broadcast %273 : vector<1x64xf32> to vector<16x64xf32>
    %275 = arith.addf %271, %274 : vector<16x64xf32>
    %276 = arith.mulf %275, %275 : vector<16x64xf32>
    %277 = arith.mulf %275, %276 : vector<16x64xf32>
    %cst_125 = arith.constant 4.471500e-02 : f32
    %278 = vector.broadcast %cst_125 : f32 to vector<16x64xf32>
    %279 = arith.mulf %278, %277 : vector<16x64xf32>
    %280 = arith.addf %275, %279 : vector<16x64xf32>
    %cst_126 = arith.constant 0.797884583 : f32
    %281 = vector.broadcast %cst_126 : f32 to vector<16x64xf32>
    %282 = arith.mulf %281, %280 : vector<16x64xf32>
    %283 = math.tanh %282 : vector<16x64xf32>
    %cst_127 = arith.constant 1.000000e+00 : f32
    %284 = vector.broadcast %cst_127 : f32 to vector<16x64xf32>
    %285 = arith.addf %284, %283 : vector<16x64xf32>
    %cst_128 = arith.constant 5.000000e-01 : f32
    %286 = vector.broadcast %cst_128 : f32 to vector<16x64xf32>
    %287 = arith.mulf %286, %285 : vector<16x64xf32>
    %288 = arith.mulf %275, %287 : vector<16x64xf32>
    %c1_129 = arith.constant 1 : index
    %c0_130 = arith.constant 0 : index
    %c0_131 = arith.constant 0 : index
    %289 = vector.load %arg15[%c1_129, %c0_130, %c0_131] : memref<2x64x32xf32, #tpu.memory_space<vmem>>, vector<1x64x32xf32>
    %290 = vector.shape_cast %289 : vector<1x64x32xf32> to vector<64x32xf32>
    %cst_132 = arith.constant dense<0.000000e+00> : vector<16x32xf32>
    %291 = tpu.matmul %288, %290, %cst_132 {dimension_numbers = #tpu.dot_dimension_numbers<[1], [0], [0], [1], [0, 0, 1, 1], [], []>} : vector<16x64xf32>, vector<64x32xf32>, vector<16x32xf32> -> vector<16x32xf32>
    %c1_133 = arith.constant 1 : index
    %c0_134 = arith.constant 0 : index
    %c0_135 = arith.constant 0 : index
    %292 = vector.load %arg16[%c1_133, %c0_134, %c0_135] : memref<2x1x32xf32, #tpu.memory_space<vmem>>, vector<1x1x32xf32>
    %293 = vector.shape_cast %292 : vector<1x1x32xf32> to vector<1x32xf32>
    %294 = vector.broadcast %293 : vector<1x32xf32> to vector<16x32xf32>
    %295 = arith.addf %291, %294 : vector<16x32xf32>
    %296 = arith.addf %295, %268 : vector<16x32xf32>
    %c1_136 = arith.constant 1 : index
    %c0_137 = arith.constant 0 : index
    %c0_138 = arith.constant 0 : index
    %297 = vector.load %arg17[%c1_136, %c0_137, %c0_138] : memref<2x1x32xf32, #tpu.memory_space<vmem>>, vector<1x1x32xf32>
    %298 = vector.shape_cast %297 : vector<1x1x32xf32> to vector<1x32xf32>
    %c1_139 = arith.constant 1 : index
    %c0_140 = arith.constant 0 : index
    %c0_141 = arith.constant 0 : index
    %299 = vector.load %arg18[%c1_139, %c0_140, %c0_141] : memref<2x1x32xf32, #tpu.memory_space<vmem>>, vector<1x1x32xf32>
    %300 = vector.shape_cast %299 : vector<1x1x32xf32> to vector<1x32xf32>
    %cst_142 = arith.constant dense<0.000000e+00> : vector<16xf32>
    %301 = vector.multi_reduction <add>, %296, %cst_142 [1] : vector<16x32xf32> to vector<16xf32>
    %302 = vector.shape_cast %301 : vector<16xf32> to vector<16x1xf32>
    %cst_143 = arith.constant 3.200000e+01 : f32
    %303 = vector.broadcast %cst_143 : f32 to vector<16x1xf32>
    %304 = arith.divf %302, %303 : vector<16x1xf32>
    %305 = vector.broadcast %304 : vector<16x1xf32> to vector<16x32xf32>
    %306 = arith.subf %296, %305 : vector<16x32xf32>
    %307 = arith.mulf %306, %306 : vector<16x32xf32>
    %cst_144 = arith.constant dense<0.000000e+00> : vector<16xf32>
    %308 = vector.multi_reduction <add>, %307, %cst_144 [1] : vector<16x32xf32> to vector<16xf32>
    %309 = vector.shape_cast %308 : vector<16xf32> to vector<16x1xf32>
    %cst_145 = arith.constant 3.200000e+01 : f32
    %310 = vector.broadcast %cst_145 : f32 to vector<16x1xf32>
    %311 = arith.divf %309, %310 : vector<16x1xf32>
    %312 = vector.broadcast %304 : vector<16x1xf32> to vector<16x32xf32>
    %313 = arith.subf %296, %312 : vector<16x32xf32>
    %cst_146 = arith.constant 9.99999996E-13 : f32
    %314 = vector.broadcast %cst_146 : f32 to vector<16x1xf32>
    %315 = arith.addf %311, %314 : vector<16x1xf32>
    %316 = math.rsqrt %315 : vector<16x1xf32>
    %317 = vector.broadcast %316 : vector<16x1xf32> to vector<16x32xf32>
    %318 = arith.mulf %313, %317 : vector<16x32xf32>
    %319 = vector.broadcast %298 : vector<1x32xf32> to vector<16x32xf32>
    %320 = arith.mulf %318, %319 : vector<16x32xf32>
    %321 = vector.broadcast %300 : vector<1x32xf32> to vector<16x32xf32>
    %322 = arith.addf %320, %321 : vector<16x32xf32>
    %323 = vector.shape_cast %322 : vector<16x32xf32> to vector<2x8x32xf32>
    %324 = vector.extract_strided_slice %323 {offsets = [0, 0, 0], sizes = [2, 1, 32], strides = [1, 1, 1]} : vector<2x8x32xf32> to vector<2x1x32xf32>
    %325 = vector.shape_cast %324 : vector<2x1x32xf32> to vector<2x32xf32>
    %c0_147 = arith.constant 0 : index
    %c0_148 = arith.constant 0 : index
    %326 = vector.load %arg19[%c0_147, %c0_148] : memref<32x32xf32, #tpu.memory_space<vmem>>, vector<32x32xf32>
    %cst_149 = arith.constant dense<0.000000e+00> : vector<2x32xf32>
    %327 = tpu.matmul %325, %326, %cst_149 {dimension_numbers = #tpu.dot_dimension_numbers<[1], [0], [0], [1], [0, 0, 1, 1], [], []>} : vector<2x32xf32>, vector<32x32xf32>, vector<2x32xf32> -> vector<2x32xf32>
    %c0_150 = arith.constant 0 : index
    %c0_151 = arith.constant 0 : index
    %328 = vector.load %arg20[%c0_150, %c0_151] : memref<1x32xf32, #tpu.memory_space<vmem>>, vector<1x32xf32>
    %329 = vector.broadcast %328 : vector<1x32xf32> to vector<2x32xf32>
    %330 = arith.addf %327, %329 : vector<2x32xf32>
    %331 = math.tanh %330 : vector<2x32xf32>
    %c0_152 = arith.constant 0 : index
    %c0_153 = arith.constant 0 : index
    %332 = vector.load %arg3[%c0_152, %c0_153] : memref<6x6xf32, #tpu.memory_space<vmem>>, vector<6x6xf32>
    %cst_154 = arith.constant dense<0.000000e+00> : vector<6xf32>
    %333 = vector.multi_reduction <add>, %332, %cst_154 [1] : vector<6x6xf32> to vector<6xf32>
    %334 = vector.shape_cast %333 : vector<6xf32> to vector<6x1xf32>
    %cst_155 = arith.constant 1.000000e+00 : f32
    %335 = vector.broadcast %cst_155 : f32 to vector<6x1xf32>
    %336 = arith.maximumf %334, %335 : vector<6x1xf32>
    %cst_156 = arith.constant dense<0.000000e+00> : vector<6xf32>
    %337 = vector.multi_reduction <add>, %332, %cst_156 [0] : vector<6x6xf32> to vector<6xf32>
    %338 = vector.shape_cast %337 : vector<6xf32> to vector<1x6xf32>
    %cst_157 = arith.constant 1.000000e+00 : f32
    %339 = vector.broadcast %cst_157 : f32 to vector<1x6xf32>
    %340 = arith.maximumf %338, %339 : vector<1x6xf32>
    %341 = math.rsqrt %336 : vector<6x1xf32>
    %342 = vector.broadcast %341 : vector<6x1xf32> to vector<6x6xf32>
    %343 = arith.mulf %342, %332 : vector<6x6xf32>
    %344 = math.rsqrt %340 : vector<1x6xf32>
    %345 = vector.broadcast %344 : vector<1x6xf32> to vector<6x6xf32>
    %346 = arith.mulf %343, %345 : vector<6x6xf32>
    %c0_158 = arith.constant 0 : index
    %c0_159 = arith.constant 0 : index
    %347 = vector.load %arg4[%c0_158, %c0_159] : memref<6x32xf32, #tpu.memory_space<vmem>>, vector<6x32xf32>
    %c0_160 = arith.constant 0 : index
    %c0_161 = arith.constant 0 : index
    %348 = vector.load %arg21[%c0_160, %c0_161] : memref<32x16xf32, #tpu.memory_space<vmem>>, vector<32x16xf32>
    %cst_162 = arith.constant dense<0.000000e+00> : vector<6x16xf32>
    %349 = tpu.matmul %347, %348, %cst_162 {dimension_numbers = #tpu.dot_dimension_numbers<[1], [0], [0], [1], [0, 0, 1, 1], [], []>} : vector<6x32xf32>, vector<32x16xf32>, vector<6x16xf32> -> vector<6x16xf32>
    %cst_163 = arith.constant dense<0.000000e+00> : vector<6x16xf32>
    %350 = tpu.matmul %346, %349, %cst_163 {dimension_numbers = #tpu.dot_dimension_numbers<[1], [0], [0], [1], [0, 0, 1, 1], [], []>} : vector<6x6xf32>, vector<6x16xf32>, vector<6x16xf32> -> vector<6x16xf32>
    %c0_164 = arith.constant 0 : index
    %c0_165 = arith.constant 0 : index
    %351 = vector.load %arg22[%c0_164, %c0_165] : memref<1x16xf32, #tpu.memory_space<vmem>>, vector<1x16xf32>
    %352 = vector.broadcast %351 : vector<1x16xf32> to vector<6x16xf32>
    %353 = arith.addf %350, %352 : vector<6x16xf32>
    %cst_166 = arith.constant dense<0.000000e+00> : vector<16xf32>
    %354 = vector.multi_reduction <add>, %353, %cst_166 [0] : vector<6x16xf32> to vector<16xf32>
    %355 = vector.shape_cast %354 : vector<16xf32> to vector<1x16xf32>
    %cst_167 = arith.constant 6.000000e+00 : f32
    %356 = vector.broadcast %cst_167 : f32 to vector<1x16xf32>
    %357 = arith.divf %355, %356 : vector<1x16xf32>
    %c0_168 = arith.constant 0 : index
    %c0_169 = arith.constant 0 : index
    %358 = vector.load %arg23[%c0_168, %c0_169] : memref<16x32xf32, #tpu.memory_space<vmem>>, vector<16x32xf32>
    %cst_170 = arith.constant dense<0.000000e+00> : vector<1x32xf32>
    %359 = tpu.matmul %357, %358, %cst_170 {dimension_numbers = #tpu.dot_dimension_numbers<[1], [0], [0], [1], [0, 0, 1, 1], [], []>} : vector<1x16xf32>, vector<16x32xf32>, vector<1x32xf32> -> vector<1x32xf32>
    %c0_171 = arith.constant 0 : index
    %c0_172 = arith.constant 0 : index
    %360 = vector.load %arg24[%c0_171, %c0_172] : memref<1x32xf32, #tpu.memory_space<vmem>>, vector<1x32xf32>
    %361 = arith.addf %359, %360 : vector<1x32xf32>
    %362 = vector.shape_cast %361 : vector<1x32xf32> to vector<1x32xf32>
    %363 = vector.broadcast %362 : vector<1x32xf32> to vector<2x32xf32>
    %c0_173 = arith.constant 0 : index
    %c0_174 = arith.constant 0 : index
    %364 = vector.load %arg25[%c0_173, %c0_174] : memref<32x2xf32, #tpu.memory_space<vmem>>, vector<32x2xf32>
    %cst_175 = arith.constant dense<0.000000e+00> : vector<2x2xf32>
    %365 = tpu.matmul %331, %364, %cst_175 {dimension_numbers = #tpu.dot_dimension_numbers<[1], [0], [0], [1], [0, 0, 1, 1], [], []>} : vector<2x32xf32>, vector<32x2xf32>, vector<2x2xf32> -> vector<2x2xf32>
    %c0_176 = arith.constant 0 : index
    %c0_177 = arith.constant 0 : index
    %366 = vector.load %arg26[%c0_176, %c0_177] : memref<32x2xf32, #tpu.memory_space<vmem>>, vector<32x2xf32>
    %cst_178 = arith.constant dense<0.000000e+00> : vector<2x2xf32>
    %367 = tpu.matmul %363, %366, %cst_178 {dimension_numbers = #tpu.dot_dimension_numbers<[1], [0], [0], [1], [0, 0, 1, 1], [], []>} : vector<2x32xf32>, vector<32x2xf32>, vector<2x2xf32> -> vector<2x2xf32>
    %368 = arith.addf %365, %367 : vector<2x2xf32>
    %c0_179 = arith.constant 0 : index
    %c0_180 = arith.constant 0 : index
    %369 = vector.load %arg27[%c0_179, %c0_180] : memref<1x2xf32, #tpu.memory_space<vmem>>, vector<1x2xf32>
    %370 = vector.broadcast %369 : vector<1x2xf32> to vector<2x2xf32>
    %371 = arith.addf %368, %370 : vector<2x2xf32>
    %372 = arith.negf %371 : vector<2x2xf32>
    %373 = math.exp %372 : vector<2x2xf32>
    %cst_181 = arith.constant 1.000000e+00 : f32
    %374 = vector.broadcast %cst_181 : f32 to vector<2x2xf32>
    %375 = arith.addf %374, %373 : vector<2x2xf32>
    %376 = arith.divf %374, %375 : vector<2x2xf32>
    %377 = vector.extract_strided_slice %376 {offsets = [0, 0], sizes = [2, 1], strides = [1, 1]} : vector<2x2xf32> to vector<2x1xf32>
    %378 = vector.broadcast %377 : vector<2x1xf32> to vector<2x32xf32>
    %379 = arith.mulf %378, %331 : vector<2x32xf32>
    %380 = vector.extract_strided_slice %376 {offsets = [0, 1], sizes = [2, 1], strides = [1, 1]} : vector<2x2xf32> to vector<2x1xf32>
    %381 = vector.broadcast %380 : vector<2x1xf32> to vector<2x32xf32>
    %382 = arith.mulf %381, %363 : vector<2x32xf32>
    %383 = arith.addf %379, %382 : vector<2x32xf32>
    %c0_182 = arith.constant 0 : index
    %c0_183 = arith.constant 0 : index
    %384 = vector.load %arg28[%c0_182, %c0_183] : memref<32x3xf32, #tpu.memory_space<vmem>>, vector<32x3xf32>
    %cst_184 = arith.constant dense<0.000000e+00> : vector<2x3xf32>
    %385 = tpu.matmul %383, %384, %cst_184 {dimension_numbers = #tpu.dot_dimension_numbers<[1], [0], [0], [1], [0, 0, 1, 1], [], []>} : vector<2x32xf32>, vector<32x3xf32>, vector<2x3xf32> -> vector<2x3xf32>
    %c0_185 = arith.constant 0 : index
    %c0_186 = arith.constant 0 : index
    %386 = vector.load %arg29[%c0_185, %c0_186] : memref<1x3xf32, #tpu.memory_space<vmem>>, vector<1x3xf32>
    %387 = vector.broadcast %386 : vector<1x3xf32> to vector<2x3xf32>
    %388 = arith.addf %385, %387 : vector<2x3xf32>
    %c0_187 = arith.constant 0 : index
    %c0_188 = arith.constant 0 : index
    %389 = vector.load %arg30[%c0_187, %c0_188] : memref<2x3xf32, #tpu.memory_space<vmem>>, vector<2x3xf32>
    tpu.vector_store %arg30[%c0_187, %c0_188], %388 {strides = array<i32>} : memref<2x3xf32, #tpu.memory_space<vmem>>, vector<2x3xf32>,
    return
  }
  func.func @transform_0(%arg0: i32) -> (i32, i32) {
    %c0_i32 = arith.constant 0 : i32
    %c0_i32_0 = arith.constant 0 : i32
    %c0_i32_1 = arith.constant 0 : i32
    return %c0_i32, %c0_i32_0 : i32, i32
  }
  func.func @transform_1(%arg0: i32) -> (i32, i32) {
    %c0_i32 = arith.constant 0 : i32
    %c0_i32_0 = arith.constant 0 : i32
    %c0_i32_1 = arith.constant 0 : i32
    return %c0_i32, %c0_i32_0 : i32, i32
  }
  func.func @transform_2(%arg0: i32) -> (i32, i32) {
    %c0_i32 = arith.constant 0 : i32
    %c0_i32_0 = arith.constant 0 : i32
    %c0_i32_1 = arith.constant 0 : i32
    return %c0_i32, %c0_i32_0 : i32, i32
  }
  func.func @transform_3(%arg0: i32) -> (i32, i32) {
    %c0_i32 = arith.constant 0 : i32
    %c0_i32_0 = arith.constant 0 : i32
    %c0_i32_1 = arith.constant 0 : i32
    return %c0_i32, %c0_i32_0 : i32, i32
  }
  func.func @transform_4(%arg0: i32) -> (i32, i32) {
    %c0_i32 = arith.constant 0 : i32
    %c0_i32_0 = arith.constant 0 : i32
    %c0_i32_1 = arith.constant 0 : i32
    return %c0_i32, %c0_i32_0 : i32, i32
  }
  func.func @transform_5(%arg0: i32) -> (i32, i32) {
    %c0_i32 = arith.constant 0 : i32
    %c0_i32_0 = arith.constant 0 : i32
    %c0_i32_1 = arith.constant 0 : i32
    return %c0_i32, %c0_i32_0 : i32, i32
  }
  func.func @transform_6(%arg0: i32) -> (i32, i32, i32) {
    %c0_i32 = arith.constant 0 : i32
    %c0_i32_0 = arith.constant 0 : i32
    %c0_i32_1 = arith.constant 0 : i32
    %c0_i32_2 = arith.constant 0 : i32
    return %c0_i32, %c0_i32_0, %c0_i32_1 : i32, i32, i32
  }
  func.func @transform_7(%arg0: i32) -> (i32, i32, i32) {
    %c0_i32 = arith.constant 0 : i32
    %c0_i32_0 = arith.constant 0 : i32
    %c0_i32_1 = arith.constant 0 : i32
    %c0_i32_2 = arith.constant 0 : i32
    return %c0_i32, %c0_i32_0, %c0_i32_1 : i32, i32, i32
  }
  func.func @transform_8(%arg0: i32) -> (i32, i32, i32) {
    %c0_i32 = arith.constant 0 : i32
    %c0_i32_0 = arith.constant 0 : i32
    %c0_i32_1 = arith.constant 0 : i32
    %c0_i32_2 = arith.constant 0 : i32
    return %c0_i32, %c0_i32_0, %c0_i32_1 : i32, i32, i32
  }
  func.func @transform_9(%arg0: i32) -> (i32, i32, i32) {
    %c0_i32 = arith.constant 0 : i32
    %c0_i32_0 = arith.constant 0 : i32
    %c0_i32_1 = arith.constant 0 : i32
    %c0_i32_2 = arith.constant 0 : i32
    return %c0_i32, %c0_i32_0, %c0_i32_1 : i32, i32, i32
  }
  func.func @transform_10(%arg0: i32) -> (i32, i32, i32) {
    %c0_i32 = arith.constant 0 : i32
    %c0_i32_0 = arith.constant 0 : i32
    %c0_i32_1 = arith.constant 0 : i32
    %c0_i32_2 = arith.constant 0 : i32
    return %c0_i32, %c0_i32_0, %c0_i32_1 : i32, i32, i32
  }
  func.func @transform_11(%arg0: i32) -> (i32, i32, i32) {
    %c0_i32 = arith.constant 0 : i32
    %c0_i32_0 = arith.constant 0 : i32
    %c0_i32_1 = arith.constant 0 : i32
    %c0_i32_2 = arith.constant 0 : i32
    return %c0_i32, %c0_i32_0, %c0_i32_1 : i32, i32, i32
  }
  func.func @transform_12(%arg0: i32) -> (i32, i32, i32) {
    %c0_i32 = arith.constant 0 : i32
    %c0_i32_0 = arith.constant 0 : i32
    %c0_i32_1 = arith.constant 0 : i32
    %c0_i32_2 = arith.constant 0 : i32
    return %c0_i32, %c0_i32_0, %c0_i32_1 : i32, i32, i32
  }
  func.func @transform_13(%arg0: i32) -> (i32, i32, i32) {
    %c0_i32 = arith.constant 0 : i32
    %c0_i32_0 = arith.constant 0 : i32
    %c0_i32_1 = arith.constant 0 : i32
    %c0_i32_2 = arith.constant 0 : i32
    return %c0_i32, %c0_i32_0, %c0_i32_1 : i32, i32, i32
  }
  func.func @transform_14(%arg0: i32) -> (i32, i32, i32) {
    %c0_i32 = arith.constant 0 : i32
    %c0_i32_0 = arith.constant 0 : i32
    %c0_i32_1 = arith.constant 0 : i32
    %c0_i32_2 = arith.constant 0 : i32
    return %c0_i32, %c0_i32_0, %c0_i32_1 : i32, i32, i32
  }
  func.func @transform_15(%arg0: i32) -> (i32, i32, i32) {
    %c0_i32 = arith.constant 0 : i32
    %c0_i32_0 = arith.constant 0 : i32
    %c0_i32_1 = arith.constant 0 : i32
    %c0_i32_2 = arith.constant 0 : i32
    return %c0_i32, %c0_i32_0, %c0_i32_1 : i32, i32, i32
  }
  func.func @transform_16(%arg0: i32) -> (i32, i32, i32) {
    %c0_i32 = arith.constant 0 : i32
    %c0_i32_0 = arith.constant 0 : i32
    %c0_i32_1 = arith.constant 0 : i32
    %c0_i32_2 = arith.constant 0 : i32
    return %c0_i32, %c0_i32_0, %c0_i32_1 : i32, i32, i32
  }
  func.func @transform_17(%arg0: i32) -> (i32, i32, i32) {
    %c0_i32 = arith.constant 0 : i32
    %c0_i32_0 = arith.constant 0 : i32
    %c0_i32_1 = arith.constant 0 : i32
    %c0_i32_2 = arith.constant 0 : i32
    return %c0_i32, %c0_i32_0, %c0_i32_1 : i32, i32, i32
  }
  func.func @transform_18(%arg0: i32) -> (i32, i32) {
    %c0_i32 = arith.constant 0 : i32
    %c0_i32_0 = arith.constant 0 : i32
    %c0_i32_1 = arith.constant 0 : i32
    return %c0_i32, %c0_i32_0 : i32, i32
  }
  func.func @transform_19(%arg0: i32) -> (i32, i32) {
    %c0_i32 = arith.constant 0 : i32
    %c0_i32_0 = arith.constant 0 : i32
    %c0_i32_1 = arith.constant 0 : i32
    return %c0_i32, %c0_i32_0 : i32, i32
  }
  func.func @transform_20(%arg0: i32) -> (i32, i32) {
    %c0_i32 = arith.constant 0 : i32
    %c0_i32_0 = arith.constant 0 : i32
    %c0_i32_1 = arith.constant 0 : i32
    return %c0_i32, %c0_i32_0 : i32, i32
  }
  func.func @transform_21(%arg0: i32) -> (i32, i32) {
    %c0_i32 = arith.constant 0 : i32
    %c0_i32_0 = arith.constant 0 : i32
    %c0_i32_1 = arith.constant 0 : i32
    return %c0_i32, %c0_i32_0 : i32, i32
  }
  func.func @transform_22(%arg0: i32) -> (i32, i32) {
    %c0_i32 = arith.constant 0 : i32
    %c0_i32_0 = arith.constant 0 : i32
    %c0_i32_1 = arith.constant 0 : i32
    return %c0_i32, %c0_i32_0 : i32, i32
  }
  func.func @transform_23(%arg0: i32) -> (i32, i32) {
    %c0_i32 = arith.constant 0 : i32
    %c0_i32_0 = arith.constant 0 : i32
    %c0_i32_1 = arith.constant 0 : i32
    return %c0_i32, %c0_i32_0 : i32, i32
  }
  func.func @transform_24(%arg0: i32) -> (i32, i32) {
    %c0_i32 = arith.constant 0 : i32
    %c0_i32_0 = arith.constant 0 : i32
    %c0_i32_1 = arith.constant 0 : i32
    return %c0_i32, %c0_i32_0 : i32, i32
  }
  func.func @transform_25(%arg0: i32) -> (i32, i32) {
    %c0_i32 = arith.constant 0 : i32
    %c0_i32_0 = arith.constant 0 : i32
    %c0_i32_1 = arith.constant 0 : i32
    return %c0_i32, %c0_i32_0 : i32, i32
  }
  func.func @transform_26(%arg0: i32) -> (i32, i32) {
    %c0_i32 = arith.constant 0 : i32
    %c0_i32_0 = arith.constant 0 : i32
    %c0_i32_1 = arith.constant 0 : i32
    return %c0_i32, %c0_i32_0 : i32, i32
  }
  func.func @transform_27(%arg0: i32) -> (i32, i32) {
    %c0_i32 = arith.constant 0 : i32
    %c0_i32_0 = arith.constant 0 : i32
    %c0_i32_1 = arith.constant 0 : i32
    return %c0_i32, %c0_i32_0 : i32, i32
  }
  func.func @transform_28(%arg0: i32) -> (i32, i32) {
    %c0_i32 = arith.constant 0 : i32
    %c0_i32_0 = arith.constant 0 : i32
    %c0_i32_1 = arith.constant 0 : i32
    return %c0_i32, %c0_i32_0 : i32, i32
  }
  func.func @transform_29(%arg0: i32) -> (i32, i32) {
    %c0_i32 = arith.constant 0 : i32
    %c0_i32_0 = arith.constant 0 : i32
    %c0_i32_1 = arith.constant 0 : i32
    return %c0_i32, %c0_i32_0 : i32, i32
  }
}

</mosaic_0001>

<bundles_post_ra>
// kernel: forward.1
= control target key start
LH: loop header
LB: loop body
LE: loop exit
PB: predicated region body
PF: predicated region fallthrough
CT: control target
= control target key end

     0   :  { %s3972_s6 = smov 1   ;;  %s3973_s10 = smov 2   ;;  %s4522_s0 = inlined_call_operand.smem [shape: u32[30], index: -1, kind: input, shape index: {}] }
   0x1   :  { %s4020_s5 = sld [smem:[%s4522_s0]]   ;;  %s3974_s14 = smov 3  }
   0x2   :  { %s4025_s9 = sld [smem:[%s4522_s0 + %s3972_s6]]   ;;  %s3975_s18 = smov 4  }
   0x3   :  { %s4030_s13 = sld [smem:[%s4522_s0 + %s3973_s10]]   ;;  %s3976_s22 = smov 5  }
   0x4   :  { %s4035_s17 = sld [smem:[%s4522_s0 + %s3974_s14]]   ;;  %s3977_s26 = smov 6  }
   0x5   :  { %s4040_s21 = sld [smem:[%s4522_s0 + %s3975_s18]]   ;;  %s3978_s30 = smov 7  }
   0x6   :  { %s4045_s25 = sld [smem:[%s4522_s0 + %s3976_s22]]   ;;  %s3979_s4 = smov 8  }
   0x7   :  { %s4050_s29 = sld [smem:[%s4522_s0 + %s3977_s26]]   ;;  %s3980_s10 = smov 9  }
   0x8   :  { %s4055_s3 = sld [smem:[%s4522_s0 + %s3978_s30]]   ;;  %s3981_s15 = smov 10  }
   0x9   :  { %4530 = sst [smem:[#allocation5_spill]] %s4030_s13  ;;  %s3982_s20 = smov 11  }
   0xa   :  { %4531 = sst [smem:[#allocation6_spill]] %s4035_s17  ;;  %s3983_s26 = smov 12  }
   0xb   :  { %s4060_s8 = sld [smem:[%s4522_s0 + %s3979_s4]]   ;;  %s3984_s1 = smov 13  }
   0xc   :  { %s4065_s14 = sld [smem:[%s4522_s0 + %s3980_s10]]   ;;  %s3985_s7 = smov 14  }
   0xd   :  { %s4070_s19 = sld [smem:[%s4522_s0 + %s3981_s15]]   ;;  %s3986_s15 = smov 15  }
   0xe   :  { %s4075_s24 = sld [smem:[%s4522_s0 + %s3982_s20]]   ;;  %s3987_s22 = smov 16  }
   0xf   :  { %s4080_s30 = sld [smem:[%s4522_s0 + %s3983_s26]]   ;;  %s3988_s28 = smov 17  }
  0x10   :  { %s4085_s6 = sld [smem:[%s4522_s0 + %s3984_s1]]  }
  0x11   :  { %s4090_s12 = sld [smem:[%s4522_s0 + %s3985_s7]]   ;;  %s3989_s7 = smov 18  }
  0x12   :  { %s4095_s20 = sld [smem:[%s4522_s0 + %s3986_s15]]   ;;  %s3990_s15 = smov 19  }
  0x13   :  { %s4100_s27 = sld [smem:[%s4522_s0 + %s3987_s22]]   ;;  %s3991_s22 = smov 20  }
  0x14   :  { %s4105_s4 = sld [smem:[%s4522_s0 + %s3988_s28]]   ;;  %s3992_s28 = smov 21  }
  0x15   :  { %s4110_s17 = sld [smem:[%s4522_s0 + %s3989_s7]]   ;;  %s3993_s7 = smov 22  }
  0x16   :  { %s4115_s13 = sld [smem:[%s4522_s0 + %s3990_s15]]   ;;  %s3994_s15 = smov 23  }
  0x19   :  { %4532 = sst [smem:[#allocation7_spill]] %s4100_s27 }
  0x1a   :  { %4533 = sst [smem:[#allocation8_spill]] %s4105_s4 }
  0x1b   :  { %4534 = sst [smem:[#allocation9_spill]] %s4110_s17 }
  0x1c   :  { %4535 = sst [smem:[#allocation10_spill]] %s4115_s13 }
  0x1d   :  { %s4120_s27 = sld [smem:[%s4522_s0 + %s3991_s22]]   ;;  %s3995_s22 = smov 24  }
  0x1e   :  { %s4125_s4 = sld [smem:[%s4522_s0 + %s3992_s28]]   ;;  %s3996_s28 = smov 25  }
  0x1f   :  { %s4130_s17 = sld [smem:[%s4522_s0 + %s3993_s7]]   ;;  %s3997_s7 = smov 26  }
  0x20   :  { %s4135_s13 = sld [smem:[%s4522_s0 + %s3994_s15]]   ;;  %s3998_s15 = smov 27  }
  0x23   :  { %4536 = sst [smem:[#allocation11_spill]] %s4120_s27 }
  0x24   :  { %4537 = sst [smem:[#allocation12_spill]] %s4125_s4 }
  0x25   :  { %4538 = sst [smem:[#allocation13_spill]] %s4130_s17 }
  0x26   :  { %4539 = sst [smem:[#allocation14_spill]] %s4135_s13 }
  0x27   :  { %s4140_s27 = sld [smem:[%s4522_s0 + %s3995_s22]]   ;;  %s3999_s22 = smov 28  }
  0x28   :  { %s4145_s4 = sld [smem:[%s4522_s0 + %s3996_s28]]   ;;  %s4000_s28 = smov 29  }
  0x29   :  { %s4150_s17 = sld [smem:[%s4522_s0 + %s3997_s7]]  }
  0x2a   :  { %s4155_s13 = sld [smem:[%s4522_s0 + %s3998_s15]]  }
  0x2d   :  { %4540 = sst [smem:[#allocation15_spill]] %s4140_s27 }
  0x2e   :  { %4541 = sst [smem:[#allocation16_spill]] %s4145_s4 }
  0x2f   :  { %s4160_s27 = sld [smem:[%s4522_s0 + %s3999_s22]]  }
  0x30   :  { %s4165_s4 = sld [smem:[%s4522_s0 + %s4000_s28]]  }
  0x31   :  { %v123_v0 = vld [vmem:[%s4020_s5] sm:$0xff]  ;;  %vm127_vm0 = vcmask 261120   ;;  %v124_v1 = vld [vmem:[%s4020_s5 + $0x8] sm:$0xff] }
  0x32   :  { %64 = vsyncpa [#allocation3], 0  ;;  %v128_v2 = vsel %vm127_vm0, %v123_v0, 0.0  ;;  %v131_v3 = vsel %vm127_vm0, %v124_v1, 0.0  ;;  %v200_v14 = vld [vmem:[%s4050_s29 + $0x18] sm:$0xff]  ;;  %v199_v15 = vld [vmem:[%s4050_s29 + $0x10] sm:$0xff]  ;;  %v178_v44 = vlaneseq }
  0x33   :  { %129 = vadd.xlane.f32.xlu0 %v128_v2  ;;  %3581 = vmatprep.subr.mxu0 %v200_v14  ;;  %v198_v16 = vld [vmem:[%s4050_s29 + $0x8] sm:$0xff]  ;;  %v197_v17 = vld [vmem:[%s4050_s29] sm:$0xff]  ;;  %v4001_v34 = vmov 0.0   ;;  %vm4002_vm1 = vmmov 0   ;;  %s4003_s0 = smov 96   ;;  %vm299_vm2 = vcmask 130048  }
  0x34   :  { %3582 = vmatpush3.msra.mxu0 %v200_v14  ;;  %v3356_v25 = vld [vmem:[%s4040_s21] ss:$0 sm:$0xff]  ;;  %3592 = vmatprep.subr.mxu1 %v4001_v34  ;;  %v4004_v42 = vmov 1966171168   ;;  %v179_v48 = vshrl.u32 %v178_v44, 7  ;;  %vm465_vm3 = vcmask 64512  }
  0x35   :  { %3583 = vmatprep.subr.mxu0 %v199_v15  ;;  %v3357_v27 = vld [vmem:[%s4045_s25] ss:$0 sm:$0xff]  ;;  %3594 = vmatprep.mubr.msk.f32.mxu1 %vm4002_vm1, %v4001_v34  ;;  %v176_v43 = vunpack.c.l.s4 %v4004_v42  ;;  %s4005_s5 = smov 64   ;;  %s4007_s21 = smov 112   ;;  %vm1315_vm4 = vcmask 523264   ;;  %vm2778_vm5 = vcmask 46080  }
  0x36   :  { %3584 = vmatpush3.msra.mxu0 %v199_v15  ;;  %v3358_v35 = vld [vmem:[%s4055_s3] ss:$0 sm:$0xff]  ;;  %v4212_v53 = vsub.s32 0, %v179_v48  ;;  %s4008_s25 = smov 48   ;;  %s4542_s7 = sld [smem:[#allocation7_spill]]  ;;  %vm2702_vm6 = vcmask 1041409  }
  0x37   :  { %132 = vadd.xlane.f32.xlu0 %v131_v3  ;;  %3585 = vmatprep.subr.mxu0 %v198_v16  ;;  %v171_v45 = vld [vmem:[%s4025_s9] sm:$0x3]  ;;  %v177_v47 = vunpack.c.0.s8 %v176_v43  ;;  %s4006_s9 = smov 80   ;;  %s4543_s10 = sld [smem:[#allocation8_spill]]  ;;  %vm2883_vm7 = vcmask 1045504   ;;  %vm2879_vm8 = vcmask 48128  }
  0x38   :  { %3586 = vmatpush3.msra.mxu0 %v198_v16  ;;  %v172_v46 = vsub.f32 1.0, %v171_v45  ;;  %vm2957_vm9 = vcmask 128000   ;;  %vm3311_vm10 = vcmask 17408  }
  0x39   :  { %3587 = vmatprep.subr.mxu0 %v197_v17  ;;  %v180_v50 = vsub.s32 %v177_v47, %v179_v48 }
  0x3a   :  { %3588 = vmatpush3.msra.mxu0 %v197_v17  ;;  %v173_v49 = vmul.f32 -10000.0, %v172_v46 }
  0x3c   :  { %v181_v51 = vrot.slane %v173_v49, %v180_v50 }
  0x3e   :  { %v189_v52 = vrot.slane %v181_v51, %v180_v50  ;;  %v182_v54 = vcombine.high %v181_v51, %v181_v51 }
  0x40   :  { %v4215_v55 = vrot.slane %v189_v52, %v4212_v53  ;;  %v196_v56 = vrot.slane %v182_v54, %v180_v50 }
  0x42   :  { %v4219_v61 = vrot.slane %v196_v56, %v4212_v53 }
  0xbc   :  { %v130_v4 = vpop.xlane.xlu0 %129 }
  0xbd   :  { %v135_v5 = vmul.f32 0.03125, %v130_v4 }
  0xbf   :  { %v137_v6 = vsub.f32 %v123_v0, %v135_v5 }
  0xc0   :  { %v133_v7 = vpop.xlane.xlu0 %132 }
  0xc1   :  { %v136_v8 = vmul.f32 0.03125, %v133_v7  ;;  %v139_v9 = vmul.f32 %v137_v6, %v137_v6 }
  0xc3   :  { %v138_v10 = vsub.f32 %v124_v1, %v136_v8  ;;  %v141_v11 = vsel %vm127_vm0, %v139_v9, 0.0 }
  0xc4   :  { %142 = vadd.xlane.f32.xlu1 %v141_v11 }
  0xc5   :  { %v140_v12 = vmul.f32 %v138_v10, %v138_v10 }
  0xc7   :  { %v144_v13 = vsel %vm127_vm0, %v140_v12, 0.0 }
  0xc8   :  { %145 = vadd.xlane.f32.xlu1 %v144_v13 }
 0x14d   :  { %v143_v18 = vpop.xlane.xlu1 %142 }
 0x14e   :  { %v147_v19 = vmul.f32 0.03125, %v143_v18 }
 0x150   :  { %v149_v20 = vadd.f32 1e-12, %v147_v19 }
 0x151   :  { %v146_v21 = vpop.xlane.xlu1 %145 }
 0x152   :  { %3880 = vrsqrt.f32 %v149_v20  ;;  %v148_v22 = vmul.f32 0.03125, %v146_v21 }
 0x154   :  { %v150_v23 = vadd.f32 1e-12, %v148_v22 }
 0x156   :  { %3882 = vrsqrt.f32 %v150_v23 }
 0x15f   :  { %v3881_v24 = vpop.eup %3880 }
 0x160   :  { %v153_v26 = vmul.f32 %v3881_v24, %v137_v6  ;;  %v641_v24 = vld [vmem:[%s4060_s8 + $0x8] sm:$0xff] }
 0x161   :  { %3612 = vmatprep.subr.mxu0 %v641_v24 }
 0x162   :  { %v161_v28 = vmul.f32 %v3356_v25, %v153_v26 }
 0x163   :  { %v3883_v29 = vpop.eup %3882 }
 0x164   :  { %v154_v30 = vmul.f32 %v3883_v29, %v138_v10  ;;  %v4179_v31 = vadd.f32 %v3357_v27, %v161_v28 }
 0x166   :  { %v162_v32 = vmul.f32 %v3356_v25, %v154_v30  ;;  %3589 = vmatprep.mubr.msk.f32.mxu0 %vm127_vm0, %v4179_v31  ;;  %v640_v25 = vld [vmem:[%s4060_s8] sm:$0xff] }
 0x168   :  { %v4183_v33 = vadd.f32 %v3357_v27, %v162_v32 }
 0x16a   :  { %3590 = vmatmul.mubr.msk.f32.vlgmr.msra.gmra.mxu0 %vm127_vm0, %v4183_v33 }
 0x16b   :  { %3613 = vmatpush3.msra.mxu0 %v641_v24 }
 0x16c   :  { %3614 = vmatprep.subr.mxu0 %v640_v25 }
 0x16d   :  { %3615 = vmatpush3.msra.mxu0 %v640_v25 }
 0x16e   :  { %3624 = vmatprep.subr.mxu0 %v4001_v34 }
 0x22a   :  { %v3591_v36 = vpop.f32.mrf.mxu0 }
 0x22b   :  { %v4191_v37 = vadd.f32 %v3591_v36, %v3358_v35 }
 0x22c   :  { %v280_v38 = vpop.f32.mrf.mxu0 }
 0x22d   :  { %v4193_v39 = vadd.f32 %v3358_v35, %v280_v38  ;;  %375 = vrot.lane.b32.xlu1 %v4191_v37, %s4003_s0 }
 0x22f   :  { %297 = vrot.lane.b32.xlu0 %v4193_v39, %s4003_s0 }
 0x29f   :  { %v376_v41 = vpop.permute.xlu1 %375 }
 0x2a1   :  { %v298_v40 = vpop.permute.xlu0 %297 }
 0x2a2   :  { %3593 = vmatpush3.xpose.msk.msra.mxu1 %vm299_vm2, %v298_v40 }
 0x2a3   :  { %3597 = vmatprep.subr.mxu1 %v4001_v34 }
 0x2a5   :  { %3595 = vmatmul.mubr.msk.f32.vlgmr.msra.gmra.mxu1 %vm299_vm2, %v4193_v39 }
 0x2a6   :  { %3598 = vmatpush3.xpose.msk.msra.mxu1 %vm299_vm2, %v376_v41  ;;  %3599 = vmatprep.mubr.msk.f32.mxu1 %vm4002_vm1, %v4001_v34 }
 0x2a7   :  { %3602 = vmatprep.subr.mxu1 %v4001_v34 }
 0x2a9   :  { %3600 = vmatmul.mubr.msk.f32.vlgmr.msra.gmra.mxu1 %vm299_vm2, %v4191_v37 }
 0x2aa   :  { %3604 = vmatprep.mubr.msk.f32.mxu1 %vm4002_vm1, %v4001_v34 }
 0x365   :  { %v370_v57 = vpop.f32.mrf.mxu1 }
 0x366   :  { %v451_v58 = vmul.f32 0.25, %v370_v57 }
 0x367   :  { %v3596_v59 = vpop.f32.mrf.mxu1 }
 0x368   :  { %v463_v60 = vadd.f32 %v4215_v55, %v451_v58 }
 0x369   :  { %v447_v62 = vpop.f32.mrf.mxu1 }
 0x36a   :  { %v452_v63 = vmul.f32 0.25, %v447_v62  ;;  %v466_v0 = vsel %vm465_vm3, %v463_v60, -inf }
 0x36b   :  { %467 = vmax.xlane.f32.xlu1 %v466_v0  ;;  %v3601_v1 = vpop.f32.mrf.mxu1 }
 0x36c   :  { %v464_v2 = vadd.f32 %v4219_v61, %v452_v63 }
 0x36e   :  { %v469_v3 = vsel %vm465_vm3, %v464_v2, -inf }
 0x36f   :  { %470 = vmax.xlane.f32.xlu0 %v469_v3 }
 0x3f4   :  { %v468_v4 = vpop.xlane.xlu1 %467 }
 0x3f5   :  { %v472_v5 = vsub.f32 %v463_v60, %v468_v4 }
 0x3f7   :  { %v474_v6 = vmul.f32 1.442695, %v472_v5  ;;  %v1060_v5 = vld [vmem:[%s4060_s8 + $0x18] sm:$0xff] }
 0x3f8   :  { %v471_v7 = vpop.xlane.xlu0 %470 }
 0x3f9   :  { %3884 = vpow2.f32 %v474_v6  ;;  %v473_v8 = vsub.f32 %v464_v2, %v471_v7  ;;  %v1059_v6 = vld [vmem:[%s4060_s8 + $0x10] sm:$0xff] }
 0x3fb   :  { %v476_v9 = vmul.f32 1.442695, %v473_v8 }
 0x3fd   :  { %3886 = vpow2.f32 %v476_v9 }
 0x406   :  { %v3885_v10 = vpop.eup %3884 }
 0x407   :  { %v478_v11 = vsel %vm465_vm3, %v3885_v10, 0.0 }
 0x408   :  { %479 = vadd.xlane.f32.xlu0 %v478_v11 }
 0x40a   :  { %v3887_v12 = vpop.eup %3886 }
 0x40b   :  { %v481_v13 = vsel %vm465_vm3, %v3887_v12, 0.0 }
 0x40c   :  { %482 = vadd.xlane.f32.xlu1 %v481_v13 }
 0x41d   :  { %564 = vrot.lane.b32.xlu1 %v4191_v37, %s4005_s5 }
 0x41e   :  { %488 = vrot.lane.b32.xlu0 %v4193_v39, %s4005_s5 }
 0x421   :  { %727 = vrot.lane.b32.xlu1 %v4193_v39, %s4006_s9 }
 0x422   :  { %725 = vrot.lane.b32.xlu0 %v4193_v39, %s4007_s21 }
 0x425   :  { %805 = vrot.lane.b32.xlu1 %v4191_v37, %s4006_s9 }
 0x429   :  { %803 = vrot.lane.b32.xlu1 %v4191_v37, %s4007_s21 }
 0x491   :  { %v480_v14 = vpop.xlane.xlu0 %479 }
 0x492   :  { %3888 = vrcp.f32 %v480_v14 }
 0x495   :  { %v483_v15 = vpop.xlane.xlu1 %482  ;;  %v489_v16 = vpop.permute.xlu0 %488 }
 0x496   :  { %3890 = vrcp.f32 %v483_v15  ;;  %3603 = vmatpush3.msra.mxu1 %v489_v16 }
 0x497   :  { %3607 = vmatprep.subr.mxu1 %v4001_v34 }
 0x499   :  { %v565_v18 = vpop.permute.xlu1 %564  ;;  %v726_v23 = vpop.permute.xlu0 %725 }
 0x49d   :  { %v728_v22 = vpop.permute.xlu1 %727 }
 0x49f   :  { %v3889_v17 = vpop.eup %3888 }
 0x4a0   :  { %v486_v19 = vmul.f32 %v3889_v17, %v3885_v10  ;;  %v3361_v10 = vld [vmem:[%s4065_s14] ss:$0 sm:$0xff] }
 0x4a1   :  { %v806_v27 = vpop.permute.xlu1 %805 }
 0x4a2   :  { %3605 = vmatmul.mubr.msk.f32.vlgmr.msra.gmra.mxu1 %vm465_vm3, %v486_v19 }
 0x4a3   :  { %v3891_v20 = vpop.eup %3890  ;;  %3608 = vmatpush3.msra.mxu1 %v565_v18  ;;  %3609 = vmatprep.mubr.msk.f32.mxu1 %vm4002_vm1, %v4001_v34 }
 0x4a4   :  { %3619 = vmatprep.subr.mxu1 %v4001_v34  ;;  %v487_v21 = vmul.f32 %v3891_v20, %v3887_v12 }
 0x4a5   :  { %v804_v32 = vpop.permute.xlu1 %803 }
 0x4a6   :  { %3610 = vmatmul.mubr.msk.f32.vlgmr.msra.gmra.mxu1 %vm465_vm3, %v487_v21 }
 0x4a7   :  { %3620 = vmatpush3.xpose.msk.msra.mxu1 %vm299_vm2, %v728_v22  ;;  %3621 = vmatprep.mubr.msk.f32.mxu1 %vm4002_vm1, %v4001_v34 }
 0x4a8   :  { %3629 = vmatprep.subr.mxu1 %v4001_v34 }
 0x4aa   :  { %3622 = vmatmul.mubr.msk.f32.vlgmr.msra.gmra.mxu1 %vm299_vm2, %v726_v23 }
 0x4ab   :  { %3631 = vmatprep.mubr.msk.f32.mxu1 %vm4002_vm1, %v4001_v34 }
 0x562   :  { %v560_v26 = vpop.f32.mrf.mxu1 }
 0x563   :  { %3616 = vmatprep.mubr.msk.f32.mxu0 %vm299_vm2, %v560_v26 }
 0x564   :  { %v3606_v28 = vpop.f32.mrf.mxu1 }
 0x566   :  { %v636_v29 = vpop.f32.mrf.mxu1 }
 0x567   :  { %3617 = vmatmul.mubr.msk.f32.vlgmr.msra.gmra.mxu0 %vm299_vm2, %v636_v29  ;;  %v1193_v29 = vld [vmem:[%s4080_s30 + $0x18] sm:$0xff] }
 0x568   :  { %3625 = vmatpush3.xpose.msk.msra.mxu0 %vm299_vm2, %v806_v27  ;;  %v3611_v30 = vpop.f32.mrf.mxu1  ;;  %3626 = vmatprep.mubr.msk.f32.mxu0 %vm4002_vm1, %v4001_v34 }
 0x569   :  { %3634 = vmatprep.subr.mxu0 %v4001_v34  ;;  %v1192_v30 = vld [vmem:[%s4080_s30 + $0x10] sm:$0xff] }
 0x56a   :  { %v799_v35 = vpop.f32.mrf.mxu1 }
 0x56b   :  { %v881_v36 = vmul.f32 0.25, %v799_v35  ;;  %3627 = vmatmul.mubr.msk.f32.vlgmr.msra.gmra.mxu0 %vm299_vm2, %v804_v32  ;;  %v1191_v32 = vld [vmem:[%s4080_s30 + $0x8] sm:$0xff]  ;;  %v1190_v35 = vld [vmem:[%s4080_s30] sm:$0xff] }
 0x56c   :  { %v3623_v38 = vpop.f32.mrf.mxu1  ;;  %3636 = vmatprep.mubr.msk.f32.mxu0 %vm4002_vm1, %v4001_v34 }
 0x56d   :  { %v883_v40 = vadd.f32 %v881_v36, %v4215_v55 }
 0x56f   :  { %v885_v41 = vsel %vm465_vm3, %v883_v40, -inf }
 0x570   :  { %886 = vmax.xlane.f32.xlu0 %v885_v41 }
 0x5f9   :  { %v887_v42 = vpop.xlane.xlu0 %886 }
 0x5fa   :  { %v891_v43 = vsub.f32 %v883_v40, %v887_v42 }
 0x5fc   :  { %v893_v44 = vmul.f32 1.442695, %v891_v43 }
 0x5fe   :  { %3892 = vpow2.f32 %v893_v44 }
 0x60b   :  { %v3893_v45 = vpop.eup %3892 }
 0x60c   :  { %v897_v46 = vsel %vm465_vm3, %v3893_v45, 0.0 }
 0x60d   :  { %898 = vadd.xlane.f32.xlu0 %v897_v46 }
 0x627   :  { %v3618_v47 = vpop.f32.mrf.mxu0 }
 0x628   :  { %v724_v11 = vadd.f32 %v3618_v47, %v3361_v10 }
 0x629   :  { %v714_v48 = vpop.f32.mrf.mxu0 }
 0x62a   :  { %v723_v13 = vadd.f32 %v3361_v10, %v714_v48 }
 0x62b   :  { %v877_v49 = vpop.f32.mrf.mxu0 }
 0x62c   :  { %v882_v50 = vmul.f32 0.25, %v877_v49 }
 0x62d   :  { %v3628_v51 = vpop.f32.mrf.mxu0 }
 0x62e   :  { %v884_v52 = vadd.f32 %v882_v50, %v4219_v61  ;;  %v3379_v50 = vld [vmem:[%s4075_s24] ss:$0 sm:$0xff] }
 0x630   :  { %v888_v54 = vsel %vm465_vm3, %v884_v52, -inf }
 0x631   :  { %889 = vmax.xlane.f32.xlu1 %v888_v54 }
 0x642   :  { %983 = vrot.lane.b32.xlu1 %v4191_v37, %s4008_s25 }
 0x696   :  { %v899_v63 = vpop.xlane.xlu0 %898 }
 0x6ba   :  { %v890_v56 = vpop.xlane.xlu1 %889 }
 0x6bb   :  { %v892_v57 = vsub.f32 %v884_v52, %v890_v56  ;;  %v1307_v56 = vld [vmem:[%s4090_s12 + $0x38] sm:$0xff] }
 0x6bd   :  { %v895_v58 = vmul.f32 1.442695, %v892_v57  ;;  %v1306_v57 = vld [vmem:[%s4090_s12 + $0x30] sm:$0xff] }
 0x6be   :  { %v984_v59 = vpop.permute.xlu1 %983 }
 0x6bf   :  { %3894 = vpow2.f32 %v895_v58  ;;  %3635 = vmatpush3.msra.mxu0 %v984_v59  ;;  %v1305_v58 = vld [vmem:[%s4090_s12 + $0x28] sm:$0xff]  ;;  %v1304_v59 = vld [vmem:[%s4090_s12 + $0x20] sm:$0xff] }
 0x6c0   :  { %3896 = vrcp.f32 %v899_v63  ;;  %3646 = vmatprep.subr.mxu0 %v1193_v29  ;;  %v1301_v63 = vld [vmem:[%s4090_s12 + $0x8] sm:$0xff] }
 0x6cc   :  { %v3895_v60 = vpop.eup %3894 }
 0x6cd   :  { %v900_v62 = vsel %vm465_vm3, %v3895_v60, 0.0  ;;  %v3897_v1 = vpop.eup %3896 }
 0x6ce   :  { %901 = vadd.xlane.f32.xlu0 %v900_v62  ;;  %v905_v2 = vmul.f32 %v3897_v1, %v3893_v45  ;;  %v3378_v45 = vld [vmem:[%s4070_s19] ss:$0 sm:$0xff]  ;;  %v1302_v62 = vld [vmem:[%s4090_s12 + $0x10] sm:$0xff] }
 0x6cf   :  { %v3380_v1 = vld [vmem:[%s4085_s6] ss:$0 sm:$0xff] }
 0x6e4   :  { %907 = vrot.lane.b32.xlu0 %v4193_v39, %s4008_s25 }
 0x757   :  { %v902_v0 = vpop.xlane.xlu0 %901 }
 0x758   :  { %3898 = vrcp.f32 %v902_v0  ;;  %v1300_v0 = vld [vmem:[%s4090_s12] sm:$0xff] }
 0x75b   :  { %v908_v37 = vpop.permute.xlu0 %907 }
 0x75c   :  { %3630 = vmatpush3.msra.mxu1 %v908_v37 }
 0x75d   :  { %3632 = vmatmul.mubr.msk.f32.vlgmr.msra.gmra.mxu1 %vm465_vm3, %v905_v2  ;;  %3639 = vmatprep.subr.mxu1 %v1060_v5 }
 0x75e   :  { %3640 = vmatpush3.msra.mxu1 %v1060_v5 }
 0x75f   :  { %3641 = vmatprep.subr.mxu1 %v1059_v6 }
 0x760   :  { %3642 = vmatpush3.msra.mxu1 %v1059_v6 }
 0x761   :  { %3657 = vmatprep.subr.mxu1 %v1307_v56 }
 0x765   :  { %v3899_v3 = vpop.eup %3898 }
 0x766   :  { %v906_v4 = vmul.f32 %v3899_v3, %v3895_v60  ;;  %v1303_v60 = vld [vmem:[%s4090_s12 + $0x18] sm:$0xff] }
 0x768   :  { %3637 = vmatmul.mubr.msk.f32.vlgmr.msra.gmra.mxu0 %vm465_vm3, %v906_v4 }
 0x769   :  { %3647 = vmatpush3.msra.mxu0 %v1193_v29 }
 0x76a   :  { %3648 = vmatprep.subr.mxu0 %v1192_v30 }
 0x76b   :  { %3649 = vmatpush3.msra.mxu0 %v1192_v30 }
 0x76c   :  { %3650 = vmatprep.subr.mxu0 %v1191_v32 }
 0x76d   :  { %3651 = vmatpush3.msra.mxu0 %v1191_v32 }
 0x76e   :  { %3652 = vmatprep.subr.mxu0 %v1190_v35 }
 0x76f   :  { %3653 = vmatpush3.msra.mxu0 %v1190_v35 }
 0x81d   :  { %v979_v39 = vpop.f32.mrf.mxu1 }
 0x81e   :  { %3643 = vmatprep.mubr.msk.f32.mxu1 %vm299_vm2, %v979_v39 }
 0x81f   :  { %v3633_v7 = vpop.f32.mrf.mxu1 }
 0x828   :  { %v1055_v8 = vpop.f32.mrf.mxu0 }
 0x829   :  { %3644 = vmatmul.mubr.msk.f32.vlgmr.msra.gmra.mxu1 %vm299_vm2, %v1055_v8 }
 0x82a   :  { %v3638_v9 = vpop.f32.mrf.mxu0  ;;  %3658 = vmatpush3.msra.mxu1 %v1307_v56 }
 0x82b   :  { %3659 = vmatprep.subr.mxu1 %v1306_v57 }
 0x82c   :  { %3660 = vmatpush3.msra.mxu1 %v1306_v57  ;;  %v3386_v57 = vld [vmem:[%s4542_s7] ss:$0 sm:$0xff] }
 0x82d   :  { %3661 = vmatprep.subr.mxu1 %v1305_v58 }
 0x82e   :  { %3662 = vmatpush3.msra.mxu1 %v1305_v58 }
 0x82f   :  { %3663 = vmatprep.subr.mxu1 %v1304_v59 }
 0x830   :  { %3664 = vmatpush3.msra.mxu1 %v1304_v59 }
 0x831   :  { %3665 = vmatprep.subr.mxu1 %v1303_v60 }
 0x832   :  { %3666 = vmatpush3.msra.mxu1 %v1303_v60 }
 0x833   :  { %3667 = vmatprep.subr.mxu1 %v1302_v62 }
 0x834   :  { %3668 = vmatpush3.msra.mxu1 %v1302_v62 }
 0x835   :  { %3669 = vmatprep.subr.mxu1 %v1301_v63 }
 0x836   :  { %3670 = vmatpush3.msra.mxu1 %v1301_v63  ;;  %v3387_v63 = vld [vmem:[%s4543_s10] ss:$0 sm:$0xff] }
 0x837   :  { %3671 = vmatprep.subr.mxu1 %v1300_v0 }
 0x838   :  { %3672 = vmatpush3.msra.mxu1 %v1300_v0 }
 0x839   :  { %3692 = vmatprep.subr.mxu1 %v4001_v34 }
 0x8e9   :  { %v3645_v12 = vpop.f32.mrf.mxu1 }
 0x8ea   :  { %v1143_v14 = vadd.f32 %v3645_v12, %v724_v11 }
 0x8eb   :  { %v1133_v15 = vpop.f32.mrf.mxu1 }
 0x8ec   :  { %v1142_v16 = vadd.f32 %v1133_v15, %v723_v13  ;;  %v1145_v17 = vadd.f32 %v1143_v14, %v4183_v33 }
 0x8ee   :  { %v1151_v18 = vsel %vm127_vm0, %v1145_v17, 0.0  ;;  %v1144_v19 = vadd.f32 %v1142_v16, %v4179_v31 }
 0x8ef   :  { %1152 = vadd.xlane.f32.xlu0 %v1151_v18 }
 0x8f0   :  { %v1148_v20 = vsel %vm127_vm0, %v1144_v19, 0.0 }
 0x8f1   :  { %1149 = vadd.xlane.f32.xlu1 %v1148_v20 }
 0x978   :  { %v1153_v21 = vpop.xlane.xlu0 %1152 }
 0x979   :  { %v1155_v22 = vmul.f32 0.03125, %v1153_v21 }
 0x97a   :  { %v1150_v23 = vpop.xlane.xlu1 %1149 }
 0x97b   :  { %v1157_v24 = vsub.f32 %v1145_v17, %v1155_v22  ;;  %v1154_v25 = vmul.f32 0.03125, %v1150_v23  ;;  %v3383_v22 = vld [vmem:[%s4095_s20] ss:$0 sm:$0xff] }
 0x97d   :  { %v1156_v26 = vsub.f32 %v1144_v19, %v1154_v25  ;;  %v1159_v27 = vmul.f32 %v1157_v24, %v1157_v24 }
 0x97f   :  { %v1163_v33 = vsel %vm127_vm0, %v1159_v27, 0.0  ;;  %v1158_v28 = vmul.f32 %v1156_v26, %v1156_v26 }
 0x980   :  { %1164 = vadd.xlane.f32.xlu1 %v1163_v33 }
 0x981   :  { %v1160_v31 = vsel %vm127_vm0, %v1158_v28, 0.0 }
 0x982   :  { %1161 = vadd.xlane.f32.xlu0 %v1160_v31 }
 0xa09   :  { %v1165_v36 = vpop.xlane.xlu1 %1164 }
 0xa0a   :  { %v1167_v38 = vmul.f32 0.03125, %v1165_v36 }
 0xa0b   :  { %v1162_v40 = vpop.xlane.xlu0 %1161 }
 0xa0c   :  { %v1169_v41 = vadd.f32 1e-12, %v1167_v38  ;;  %v1166_v42 = vmul.f32 0.03125, %v1162_v40 }
 0xa0e   :  { %3900 = vrsqrt.f32 %v1169_v41  ;;  %v1168_v43 = vadd.f32 1e-12, %v1166_v42 }
 0xa10   :  { %3902 = vrsqrt.f32 %v1168_v43 }
 0xa1b   :  { %v3901_v44 = vpop.eup %3900 }
 0xa1c   :  { %v1173_v46 = vmul.f32 %v3901_v44, %v1157_v24  ;;  %v3391_v44 = vld [vmem:[%s4050_s29 + $0x38] sm:$0xff] }
 0xa1d   :  { %v3903_v47 = vpop.eup %3902  ;;  %3676 = vmatprep.subr.mxu0 %v3391_v44 }
 0xa1e   :  { %v1172_v48 = vmul.f32 %v3903_v47, %v1156_v26  ;;  %v1181_v49 = vmul.f32 %v3378_v45, %v1173_v46  ;;  %v3389_v46 = vld [vmem:[%s4050_s29 + $0x28] sm:$0xff]  ;;  %v3388_v47 = vld [vmem:[%s4050_s29 + $0x20] sm:$0xff] }
 0xa20   :  { %v1180_v51 = vmul.f32 %v3378_v45, %v1172_v48  ;;  %v1189_v54 = vadd.f32 %v3379_v50, %v1181_v49  ;;  %v3390_v45 = vld [vmem:[%s4050_s29 + $0x30] sm:$0xff]  ;;  %s4544_s29 = sld [smem:[#allocation9_spill]] }
 0xa22   :  { %v4292_v52 = vadd.f32 %v3379_v50, %v1180_v51 }
 0xa24   :  { %3654 = vmatprep.mubr.msk.f32.mxu0 %vm127_vm0, %v4292_v52 }
 0xa25   :  { %3655 = vmatmul.mubr.msk.f32.vlgmr.msra.gmra.mxu0 %vm127_vm0, %v1189_v54 }
 0xa26   :  { %3677 = vmatpush3.msra.mxu0 %v3391_v44 }
 0xa27   :  { %3678 = vmatprep.subr.mxu0 %v3390_v45 }
 0xa28   :  { %3679 = vmatpush3.msra.mxu0 %v3390_v45 }
 0xa29   :  { %3680 = vmatprep.subr.mxu0 %v3389_v46 }
 0xa2a   :  { %3681 = vmatpush3.msra.mxu0 %v3389_v46 }
 0xa2b   :  { %3682 = vmatprep.subr.mxu0 %v3388_v47 }
 0xa2c   :  { %3683 = vmatpush3.msra.mxu0 %v3388_v47 }
 0xa2d   :  { %3687 = vmatprep.subr.mxu0 %v4001_v34 }
 0xae5   :  { %v3656_v37 = vpop.f32.mrf.mxu0 }
 0xae6   :  { %v1279_v2 = vadd.f32 %v3656_v37, %v3380_v1 }
 0xae7   :  { %v1273_v3 = vpop.f32.mrf.mxu0 }
 0xae8   :  { %v1283_v4 = vmul.f32 %v1279_v2, %v1279_v2  ;;  %v1274_v5 = vadd.f32 %v3380_v1, %v1273_v3 }
 0xaea   :  { %v1285_v6 = vmul.f32 %v1283_v4, %v1279_v2  ;;  %v1282_v39 = vmul.f32 %v1274_v5, %v1274_v5 }
 0xaec   :  { %v1287_v7 = vmul.f32 0.044715, %v1285_v6  ;;  %v1284_v8 = vmul.f32 %v1282_v39, %v1274_v5 }
 0xaee   :  { %v1289_v9 = vadd.f32 %v1287_v7, %v1279_v2  ;;  %v1286_v10 = vmul.f32 0.044715, %v1284_v8 }
 0xaf0   :  { %v1291_v11 = vmul.f32 0.7978846, %v1289_v9  ;;  %v1288_v12 = vadd.f32 %v1286_v10, %v1274_v5 }
 0xaf2   :  { %3904 = vtanh.f32 %v1291_v11  ;;  %v1290_v13 = vmul.f32 0.7978846, %v1288_v12 }
 0xaf4   :  { %3906 = vtanh.f32 %v1290_v13 }
 0xaff   :  { %v3905_v14 = vpop.eup %3904 }
 0xb00   :  { %v1295_v15 = vadd.f32 1.0, %v3905_v14 }
 0xb01   :  { %v3907_v16 = vpop.eup %3906 }
 0xb02   :  { %v1294_v17 = vadd.f32 1.0, %v3907_v16  ;;  %v1297_v18 = vmul.f32 0.5, %v1295_v15 }
 0xb04   :  { %v1296_v19 = vmul.f32 0.5, %v1294_v17  ;;  %v1299_v21 = vmul.f32 %v1297_v18, %v1279_v2  ;;  %v3393_v2 = vld [vmem:[%s4055_s3 + $0x1] ss:$0 sm:$0xff]  ;;  %s4545_s3 = sld [smem:[#allocation5_spill]] }
 0xb06   :  { %v1298_v20 = vmul.f32 %v1296_v19, %v1274_v5 }
 0xb08   :  { %3673 = vmatprep.mubr.msk.f32.mxu1 %vm1315_vm4, %v1298_v20 }
 0xb09   :  { %3674 = vmatmul.mubr.msk.f32.vlgmr.msra.gmra.mxu1 %vm1315_vm4, %v1299_v21 }
 0xb0a   :  { %3694 = vmatprep.mubr.msk.f32.mxu1 %vm4002_vm1, %v4001_v34 }
 0xbc9   :  { %v3675_v23 = vpop.f32.mrf.mxu1 }
 0xbca   :  { %v1394_v24 = vadd.f32 %v3675_v23, %v3383_v22 }
 0xbcb   :  { %v1388_v25 = vpop.f32.mrf.mxu1 }
 0xbcc   :  { %v1389_v26 = vadd.f32 %v3383_v22, %v1388_v25  ;;  %v1398_v27 = vadd.f32 %v1394_v24, %v1189_v54 }
 0xbce   :  { %v1404_v33 = vsel %vm127_vm0, %v1398_v27, 0.0  ;;  %v1397_v28 = vadd.f32 %v1389_v26, %v4292_v52 }
 0xbcf   :  { %1405 = vadd.xlane.f32.xlu1 %v1404_v33 }
 0xbd0   :  { %v1401_v31 = vsel %vm127_vm0, %v1397_v28, 0.0 }
 0xbd1   :  { %1402 = vadd.xlane.f32.xlu0 %v1401_v31 }
 0xc58   :  { %v1406_v29 = vpop.xlane.xlu1 %1405 }
 0xc59   :  { %v1408_v30 = vmul.f32 0.03125, %v1406_v29  ;;  %v3405_v29 = vld [vmem:[%s4060_s8 + $0x28] sm:$0xff] }
 0xc5a   :  { %v1403_v32 = vpop.xlane.xlu0 %1402 }
 0xc5b   :  { %v1410_v35 = vsub.f32 %v1398_v27, %v1408_v30  ;;  %v1407_v36 = vmul.f32 0.03125, %v1403_v32 }
 0xc5d   :  { %v1409_v38 = vsub.f32 %v1397_v28, %v1407_v36  ;;  %v1412_v40 = vmul.f32 %v1410_v35, %v1410_v35 }
 0xc5f   :  { %v1416_v41 = vsel %vm127_vm0, %v1412_v40, 0.0  ;;  %v1411_v42 = vmul.f32 %v1409_v38, %v1409_v38 }
 0xc60   :  { %1417 = vadd.xlane.f32.xlu1 %v1416_v41 }
 0xc61   :  { %v1413_v43 = vsel %vm127_vm0, %v1411_v42, 0.0  ;;  %v3404_v42 = vld [vmem:[%s4060_s8 + $0x20] sm:$0xff] }
 0xc62   :  { %1414 = vadd.xlane.f32.xlu0 %v1413_v43 }
 0xce9   :  { %v1418_v48 = vpop.xlane.xlu1 %1417 }
 0xcea   :  { %v1420_v49 = vmul.f32 0.03125, %v1418_v48 }
 0xceb   :  { %v1415_v50 = vpop.xlane.xlu0 %1414 }
 0xcec   :  { %v1422_v51 = vadd.f32 1e-12, %v1420_v49  ;;  %v1419_v52 = vmul.f32 0.03125, %v1415_v50 }
 0xcee   :  { %3908 = vrsqrt.f32 %v1422_v51  ;;  %v1421_v54 = vadd.f32 1e-12, %v1419_v52 }
 0xcf0   :  { %3910 = vrsqrt.f32 %v1421_v54 }
 0xcfb   :  { %v3909_v56 = vpop.eup %3908 }
 0xcfc   :  { %v1426_v58 = vmul.f32 %v3909_v56, %v1410_v35 }
 0xcfd   :  { %v3911_v59 = vpop.eup %3910 }
 0xcfe   :  { %v1425_v60 = vmul.f32 %v3911_v59, %v1409_v38  ;;  %v1434_v62 = vmul.f32 %v3386_v57, %v1426_v58 }
 0xd00   :  { %v1433_v0 = vmul.f32 %v3386_v57, %v1425_v60  ;;  %v4326_v37 = vadd.f32 %v3387_v63, %v1434_v62 }
 0xd02   :  { %v4324_v1 = vadd.f32 %v3387_v63, %v1433_v0 }
 0xd04   :  { %3684 = vmatprep.mubr.msk.f32.mxu0 %vm127_vm0, %v4324_v1 }
 0xd05   :  { %3685 = vmatmul.mubr.msk.f32.vlgmr.msra.gmra.mxu0 %vm127_vm0, %v4326_v37 }
 0xd06   :  { %3689 = vmatprep.mubr.msk.f32.mxu0 %vm4002_vm1, %v4001_v34 }
 0xdc5   :  { %v3686_v3 = vpop.f32.mrf.mxu0 }
 0xdc6   :  { %v4335_v4 = vadd.f32 %v3686_v3, %v3393_v2 }
 0xdc7   :  { %v1528_v5 = vpop.f32.mrf.mxu0 }
 0xdc8   :  { %v4337_v6 = vadd.f32 %v3393_v2, %v1528_v5  ;;  %1623 = vrot.lane.b32.xlu1 %v4335_v4, %s4003_s0 }
 0xdca   :  { %1546 = vrot.lane.b32.xlu0 %v4337_v6, %s4003_s0 }
 0xe3a   :  { %v1624_v39 = vpop.permute.xlu1 %1623 }
 0xe3b   :  { %3693 = vmatpush3.xpose.msk.msra.mxu1 %vm299_vm2, %v1624_v39 }
 0xe3c   :  { %v1547_v7 = vpop.permute.xlu0 %1546  ;;  %3702 = vmatprep.subr.mxu1 %v4001_v34 }
 0xe3d   :  { %3688 = vmatpush3.xpose.msk.msra.mxu0 %vm299_vm2, %v1547_v7 }
 0xe3e   :  { %3695 = vmatmul.mubr.msk.f32.vlgmr.msra.gmra.mxu1 %vm299_vm2, %v4335_v4  ;;  %3697 = vmatprep.subr.mxu0 %v4001_v34 }
 0xe3f   :  { %3704 = vmatprep.mubr.msk.f32.mxu1 %vm4002_vm1, %v4001_v34 }
 0xe40   :  { %3690 = vmatmul.mubr.msk.f32.vlgmr.msra.gmra.mxu0 %vm299_vm2, %v4337_v6 }
 0xe41   :  { %3699 = vmatprep.mubr.msk.f32.mxu0 %vm4002_vm1, %v4001_v34 }
 0xefe   :  { %v1695_v8 = vpop.f32.mrf.mxu1 }
 0xeff   :  { %v1700_v9 = vmul.f32 0.25, %v1695_v8 }
 0xf00   :  { %v1618_v10 = vpop.f32.mrf.mxu0  ;;  %v3696_v11 = vpop.f32.mrf.mxu1 }
 0xf01   :  { %v1699_v12 = vmul.f32 0.25, %v1618_v10  ;;  %v1702_v13 = vadd.f32 %v1700_v9, %v4219_v61 }
 0xf02   :  { %v3691_v14 = vpop.f32.mrf.mxu0 }
 0xf03   :  { %v1706_v15 = vsel %vm465_vm3, %v1702_v13, -inf  ;;  %v1701_v16 = vadd.f32 %v1699_v12, %v4215_v55 }
 0xf04   :  { %1707 = vmax.xlane.f32.xlu0 %v1706_v15 }
 0xf05   :  { %v1703_v17 = vsel %vm465_vm3, %v1701_v16, -inf }
 0xf06   :  { %1704 = vmax.xlane.f32.xlu1 %v1703_v17  ;;  %v3415_v17 = vld [vmem:[%s4060_s8 + $0x38] sm:$0xff] }
 0xf8d   :  { %v1708_v18 = vpop.xlane.xlu0 %1707 }
 0xf8e   :  { %v1710_v19 = vsub.f32 %v1702_v13, %v1708_v18  ;;  %v3414_v18 = vld [vmem:[%s4060_s8 + $0x30] sm:$0xff]  ;;  %s4546_s8 = sld [smem:[#allocation11_spill]] }
 0xf8f   :  { %v1705_v20 = vpop.xlane.xlu1 %1704 }
 0xf90   :  { %v1713_v21 = vmul.f32 1.442695, %v1710_v19  ;;  %v1709_v22 = vsub.f32 %v1701_v16, %v1705_v20 }
 0xf92   :  { %3912 = vpow2.f32 %v1713_v21  ;;  %v1711_v23 = vmul.f32 1.442695, %v1709_v22  ;;  %v3397_v22 = vld [vmem:[%s4065_s14 + $0x1] ss:$0 sm:$0xff]  ;;  %s4547_s14 = sld [smem:[#allocation6_spill]] }
 0xf94   :  { %3914 = vpow2.f32 %v1711_v23 }
 0xf9f   :  { %v3913_v24 = vpop.eup %3912 }
 0xfa0   :  { %v1718_v25 = vsel %vm465_vm3, %v3913_v24, 0.0 }
 0xfa1   :  { %v3915_v26 = vpop.eup %3914  ;;  %1719 = vadd.xlane.f32.xlu1 %v1718_v25 }
 0xfa2   :  { %v1715_v27 = vsel %vm465_vm3, %v3915_v26, 0.0 }
 0xfa3   :  { %1716 = vadd.xlane.f32.xlu0 %v1715_v27 }
 0xfb2   :  { %1801 = vrot.lane.b32.xlu1 %v4335_v4, %s4005_s5 }
 0xfb6   :  { %1965 = vrot.lane.b32.xlu1 %v4337_v6, %s4006_s9 }
 0xfb9   :  { %1725 = vrot.lane.b32.xlu0 %v4337_v6, %s4005_s5 }
 0xfba   :  { %2043 = vrot.lane.b32.xlu1 %v4335_v4, %s4006_s9 }
 0xfbd   :  { %1963 = vrot.lane.b32.xlu0 %v4337_v6, %s4007_s21 }
 0xfbe   :  { %2041 = vrot.lane.b32.xlu1 %v4335_v4, %s4007_s21 }
0x102a   :  { %v1720_v33 = vpop.xlane.xlu1 %1719 }
0x102b   :  { %3916 = vrcp.f32 %v1720_v33 }
0x102c   :  { %v1717_v28 = vpop.xlane.xlu0 %1716 }
0x102d   :  { %3918 = vrcp.f32 %v1717_v28 }
0x102e   :  { %v1802_v31 = vpop.permute.xlu1 %1801 }
0x102f   :  { %3703 = vmatpush3.msra.mxu1 %v1802_v31 }
0x1030   :  { %v1726_v30 = vpop.permute.xlu0 %1725  ;;  %3714 = vmatprep.subr.mxu1 %v4001_v34 }
0x1031   :  { %3698 = vmatpush3.msra.mxu0 %v1726_v30 }
0x1032   :  { %3707 = vmatprep.subr.mxu0 %v3405_v29  ;;  %v1966_v38 = vpop.permute.xlu1 %1965 }
0x1034   :  { %v1964_v41 = vpop.permute.xlu0 %1963 }
0x1036   :  { %v2044_v44 = vpop.permute.xlu1 %2043 }
0x1038   :  { %v3917_v32 = vpop.eup %3916 }
0x1039   :  { %v1724_v35 = vmul.f32 %v3917_v32, %v3913_v24 }
0x103a   :  { %v3919_v36 = vpop.eup %3918  ;;  %v2042_v51 = vpop.permute.xlu1 %2041 }
0x103b   :  { %3705 = vmatmul.mubr.msk.f32.vlgmr.msra.gmra.mxu1 %vm465_vm3, %v1724_v35  ;;  %v1723_v40 = vmul.f32 %v3919_v36, %v3915_v26 }
0x103c   :  { %3715 = vmatpush3.xpose.msk.msra.mxu1 %vm299_vm2, %v1966_v38  ;;  %3716 = vmatprep.mubr.msk.f32.mxu1 %vm4002_vm1, %v4001_v34 }
0x103d   :  { %3700 = vmatmul.mubr.msk.f32.vlgmr.msra.gmra.mxu0 %vm465_vm3, %v1723_v40  ;;  %3724 = vmatprep.subr.mxu1 %v4001_v34 }
0x103e   :  { %3708 = vmatpush3.msra.mxu0 %v3405_v29 }
0x103f   :  { %3717 = vmatmul.mubr.msk.f32.vlgmr.msra.gmra.mxu1 %vm299_vm2, %v1964_v41  ;;  %3709 = vmatprep.subr.mxu0 %v3404_v42 }
0x1040   :  { %3726 = vmatprep.mubr.msk.f32.mxu1 %vm4002_vm1, %v4001_v34  ;;  %3710 = vmatpush3.msra.mxu0 %v3404_v42 }
0x1041   :  { %3719 = vmatprep.subr.mxu0 %v4001_v34 }
0x10fb   :  { %v1873_v43 = vpop.f32.mrf.mxu1 }
0x10fd   :  { %v1797_v45 = vpop.f32.mrf.mxu0  ;;  %v3706_v46 = vpop.f32.mrf.mxu1 }
0x10fe   :  { %3711 = vmatprep.mubr.msk.f32.mxu0 %vm299_vm2, %v1797_v45  ;;  %v3424_v45 = vld [vmem:[%s4080_s30 + $0x30] sm:$0xff]  ;;  %v3423_v46 = vld [vmem:[%s4080_s30 + $0x28] sm:$0xff] }
0x10ff   :  { %v3701_v47 = vpop.f32.mrf.mxu0  ;;  %3712 = vmatmul.mubr.msk.f32.vlgmr.msra.gmra.mxu0 %vm299_vm2, %v1873_v43  ;;  %v2037_v48 = vpop.f32.mrf.mxu1 }
0x1100   :  { %v2119_v49 = vmul.f32 0.25, %v2037_v48  ;;  %3720 = vmatpush3.xpose.msk.msra.mxu0 %vm299_vm2, %v2044_v44  ;;  %3721 = vmatprep.mubr.msk.f32.mxu0 %vm4002_vm1, %v4001_v34  ;;  %v3425_v44 = vld [vmem:[%s4080_s30 + $0x38] sm:$0xff]  ;;  %v3422_v47 = vld [vmem:[%s4080_s30 + $0x20] sm:$0xff]  ;;  %s4550_s30 = sld [smem:[#allocation12_spill]] }
0x1101   :  { %v3718_v50 = vpop.f32.mrf.mxu1  ;;  %3729 = vmatprep.subr.mxu0 %v4001_v34 }
0x1102   :  { %v2121_v52 = vadd.f32 %v2119_v49, %v4215_v55 }
0x1103   :  { %3722 = vmatmul.mubr.msk.f32.vlgmr.msra.gmra.mxu0 %vm299_vm2, %v2042_v51 }
0x1104   :  { %v2123_v54 = vsel %vm465_vm3, %v2121_v52, -inf  ;;  %3731 = vmatprep.mubr.msk.f32.mxu0 %vm4002_vm1, %v4001_v34 }
0x1105   :  { %2124 = vmax.xlane.f32.xlu0 %v2123_v54 }
0x118e   :  { %v2125_v56 = vpop.xlane.xlu0 %2124 }
0x118f   :  { %v2129_v57 = vsub.f32 %v2121_v52, %v2125_v56 }
0x1191   :  { %v2131_v58 = vmul.f32 1.442695, %v2129_v57  ;;  %v3420_v57 = vld [vmem:[%s4070_s19 + $0x1] ss:$0 sm:$0xff]  ;;  %s4548_s19 = sld [smem:[#allocation13_spill]] }
0x1193   :  { %3920 = vpow2.f32 %v2131_v58 }
0x11a0   :  { %v3921_v59 = vpop.eup %3920 }
0x11a1   :  { %v2135_v60 = vsel %vm465_vm3, %v3921_v59, 0.0 }
0x11a2   :  { %2136 = vadd.xlane.f32.xlu0 %v2135_v60 }
0x11bf   :  { %v3713_v62 = vpop.f32.mrf.mxu0 }
0x11c0   :  { %v1962_v23 = vadd.f32 %v3713_v62, %v3397_v22 }
0x11c1   :  { %v1952_v63 = vpop.f32.mrf.mxu0 }
0x11c2   :  { %v1961_v25 = vadd.f32 %v3397_v22, %v1952_v63  ;;  %v3421_v63 = vld [vmem:[%s4075_s24 + $0x1] ss:$0 sm:$0xff]  ;;  %s4549_s24 = sld [smem:[#allocation16_spill]] }
0x11c3   :  { %v2115_v0 = vpop.f32.mrf.mxu0 }
0x11c4   :  { %v2120_v55 = vmul.f32 0.25, %v2115_v0 }
0x11c5   :  { %v3723_v2 = vpop.f32.mrf.mxu0 }
0x11c6   :  { %v2122_v3 = vadd.f32 %v2120_v55, %v4219_v61 }
0x11c8   :  { %v2126_v5 = vsel %vm465_vm3, %v2122_v3, -inf }
0x11c9   :  { %2127 = vmax.xlane.f32.xlu1 %v2126_v5  ;;  %v3436_v5 = vld [vmem:[%s4090_s12 + $0x70] sm:$0xff] }
0x11da   :  { %2221 = vrot.lane.b32.xlu1 %v4335_v4, %s4008_s25 }
0x122b   :  { %v2137_v61 = vpop.xlane.xlu0 %2136 }
0x1252   :  { %v2128_v39 = vpop.xlane.xlu1 %2127 }
0x1253   :  { %v2130_v7 = vsub.f32 %v2122_v3, %v2128_v39  ;;  %v3437_v3 = vld [vmem:[%s4090_s12 + $0x78] sm:$0xff]  ;;  %v3435_v39 = vld [vmem:[%s4090_s12 + $0x68] sm:$0xff] }
0x1255   :  { %v2133_v8 = vmul.f32 1.442695, %v2130_v7  ;;  %v3434_v7 = vld [vmem:[%s4090_s12 + $0x60] sm:$0xff] }
0x1256   :  { %v2222_v9 = vpop.permute.xlu1 %2221 }
0x1257   :  { %3922 = vpow2.f32 %v2133_v8  ;;  %3730 = vmatpush3.msra.mxu0 %v2222_v9  ;;  %v3433_v8 = vld [vmem:[%s4090_s12 + $0x58] sm:$0xff]  ;;  %v3432_v9 = vld [vmem:[%s4090_s12 + $0x50] sm:$0xff] }
0x1258   :  { %3924 = vrcp.f32 %v2137_v61  ;;  %3741 = vmatprep.subr.mxu0 %v3425_v44  ;;  %v3427_v61 = vld [vmem:[%s4085_s6 + $0x1] ss:$0 sm:$0xff]  ;;  %s4551_s6 = sld [smem:[#allocation10_spill]] }
0x1264   :  { %v3923_v10 = vpop.eup %3922 }
0x1265   :  { %v2138_v11 = vsel %vm465_vm3, %v3923_v10, 0.0  ;;  %v3925_v13 = vpop.eup %3924 }
0x1266   :  { %2139 = vadd.xlane.f32.xlu0 %v2138_v11  ;;  %v2143_v14 = vmul.f32 %v3925_v13, %v3921_v59  ;;  %v3430_v11 = vld [vmem:[%s4090_s12 + $0x40] sm:$0xff] }
0x127c   :  { %2145 = vrot.lane.b32.xlu0 %v4337_v6, %s4008_s25 }
0x12ef   :  { %v2140_v12 = vpop.xlane.xlu0 %2139 }
0x12f0   :  { %3926 = vrcp.f32 %v2140_v12 }
0x12f3   :  { %v2146_v4 = vpop.permute.xlu0 %2145 }
0x12f4   :  { %3725 = vmatpush3.msra.mxu1 %v2146_v4 }
0x12f5   :  { %3727 = vmatmul.mubr.msk.f32.vlgmr.msra.gmra.mxu1 %vm465_vm3, %v2143_v14  ;;  %3734 = vmatprep.subr.mxu1 %v3415_v17 }
0x12f6   :  { %3735 = vmatpush3.msra.mxu1 %v3415_v17 }
0x12f7   :  { %3736 = vmatprep.subr.mxu1 %v3414_v18 }
0x12f8   :  { %3737 = vmatpush3.msra.mxu1 %v3414_v18 }
0x12f9   :  { %3752 = vmatprep.subr.mxu1 %v3437_v3 }
0x12fd   :  { %v3927_v15 = vpop.eup %3926 }
0x12fe   :  { %v2144_v16 = vmul.f32 %v3927_v15, %v3923_v10  ;;  %v3431_v10 = vld [vmem:[%s4090_s12 + $0x48] sm:$0xff]  ;;  %s4552_s12 = sld [smem:[#allocation15_spill]] }
0x1300   :  { %3732 = vmatmul.mubr.msk.f32.vlgmr.msra.gmra.mxu0 %vm465_vm3, %v2144_v16 }
0x1301   :  { %3742 = vmatpush3.msra.mxu0 %v3425_v44 }
0x1302   :  { %3743 = vmatprep.subr.mxu0 %v3424_v45 }
0x1303   :  { %3744 = vmatpush3.msra.mxu0 %v3424_v45 }
0x1304   :  { %3745 = vmatprep.subr.mxu0 %v3423_v46 }
0x1305   :  { %3746 = vmatpush3.msra.mxu0 %v3423_v46 }
0x1306   :  { %3747 = vmatprep.subr.mxu0 %v3422_v47 }
0x1307   :  { %3748 = vmatpush3.msra.mxu0 %v3422_v47 }
0x1308   :  { %3771 = vmatprep.subr.mxu0 %v4001_v34 }
0x13b5   :  { %v2217_v6 = vpop.f32.mrf.mxu1 }
0x13b6   :  { %3738 = vmatprep.mubr.msk.f32.mxu1 %vm299_vm2, %v2217_v6 }
0x13b7   :  { %v3728_v19 = vpop.f32.mrf.mxu1 }
0x13c0   :  { %v2293_v20 = vpop.f32.mrf.mxu0 }
0x13c1   :  { %3739 = vmatmul.mubr.msk.f32.vlgmr.msra.gmra.mxu1 %vm299_vm2, %v2293_v20 }
0x13c2   :  { %v3733_v21 = vpop.f32.mrf.mxu0  ;;  %3753 = vmatpush3.msra.mxu1 %v3437_v3 }
0x13c3   :  { %3754 = vmatprep.subr.mxu1 %v3436_v5 }
0x13c4   :  { %3755 = vmatpush3.msra.mxu1 %v3436_v5  ;;  %v3444_v5 = vld [vmem:[%s4542_s7 + $0x1] ss:$0 sm:$0xff] }
0x13c5   :  { %3756 = vmatprep.subr.mxu1 %v3435_v39 }
0x13c6   :  { %3757 = vmatpush3.msra.mxu1 %v3435_v39 }
0x13c7   :  { %3758 = vmatprep.subr.mxu1 %v3434_v7 }
0x13c8   :  { %3759 = vmatpush3.msra.mxu1 %v3434_v7 }
0x13c9   :  { %3760 = vmatprep.subr.mxu1 %v3433_v8 }
0x13ca   :  { %3761 = vmatpush3.msra.mxu1 %v3433_v8  ;;  %v3445_v8 = vld [vmem:[%s4543_s10 + $0x1] ss:$0 sm:$0xff] }
0x13cb   :  { %3762 = vmatprep.subr.mxu1 %v3432_v9 }
0x13cc   :  { %3763 = vmatpush3.msra.mxu1 %v3432_v9 }
0x13cd   :  { %3764 = vmatprep.subr.mxu1 %v3431_v10 }
0x13ce   :  { %3765 = vmatpush3.msra.mxu1 %v3431_v10 }
0x13cf   :  { %3766 = vmatprep.subr.mxu1 %v3430_v11 }
0x13d0   :  { %3767 = vmatpush3.msra.mxu1 %v3430_v11 }
0x13d1   :  { %3793 = vmatprep.subr.mxu1 %v4001_v34 }
0x1481   :  { %v3740_v24 = vpop.f32.mrf.mxu1 }
0x1482   :  { %v2381_v26 = vadd.f32 %v3740_v24, %v1962_v23 }
0x1483   :  { %v2371_v27 = vpop.f32.mrf.mxu1 }
0x1484   :  { %v2380_v33 = vadd.f32 %v2371_v27, %v1961_v25  ;;  %v2383_v28 = vadd.f32 %v2381_v26, %v4326_v37 }
0x1486   :  { %v2391_v31 = vsel %vm127_vm0, %v2383_v28, 0.0  ;;  %v2382_v29 = vadd.f32 %v2380_v33, %v4324_v1 }
0x1487   :  { %2392 = vadd.xlane.f32.xlu0 %v2391_v31 }
0x1488   :  { %v2388_v30 = vsel %vm127_vm0, %v2382_v29, 0.0 }
0x1489   :  { %2389 = vadd.xlane.f32.xlu1 %v2388_v30  ;;  %v3439_v30 = vld [vmem:[%s4095_s20 + $0x1] ss:$0 sm:$0xff]  ;;  %s4553_s20 = sld [smem:[#allocation14_spill]] }
0x1510   :  { %v2393_v32 = vpop.xlane.xlu0 %2392 }
0x1511   :  { %v2395_v35 = vmul.f32 0.03125, %v2393_v32 }
0x1512   :  { %v2390_v36 = vpop.xlane.xlu1 %2389 }
0x1513   :  { %v2397_v38 = vsub.f32 %v2383_v28, %v2395_v35  ;;  %v2394_v40 = vmul.f32 0.03125, %v2390_v36 }
0x1515   :  { %v2396_v41 = vsub.f32 %v2382_v29, %v2394_v40  ;;  %v2399_v42 = vmul.f32 %v2397_v38, %v2397_v38 }
0x1517   :  { %v2403_v37 = vsel %vm127_vm0, %v2399_v42, 0.0  ;;  %v2398_v43 = vmul.f32 %v2396_v41, %v2396_v41 }
0x1518   :  { %2404 = vadd.xlane.f32.xlu1 %v2403_v37 }
0x1519   :  { %v2400_v1 = vsel %vm127_vm0, %v2398_v43, 0.0 }
0x151a   :  { %2401 = vadd.xlane.f32.xlu0 %v2400_v1 }
0x15a1   :  { %v2405_v48 = vpop.xlane.xlu1 %2404 }
0x15a2   :  { %v2407_v49 = vmul.f32 0.03125, %v2405_v48 }
0x15a3   :  { %v2402_v50 = vpop.xlane.xlu0 %2401 }
0x15a4   :  { %v2409_v51 = vadd.f32 1e-12, %v2407_v49  ;;  %v2406_v52 = vmul.f32 0.03125, %v2402_v50 }
0x15a6   :  { %3928 = vrsqrt.f32 %v2409_v51  ;;  %v2408_v54 = vadd.f32 1e-12, %v2406_v52  ;;  %v2691_v52 = vld [vmem:[%s4544_s29 + $0x18] sm:$0xff] }
0x15a8   :  { %3930 = vrsqrt.f32 %v2408_v54  ;;  %v2690_v54 = vld [vmem:[%s4544_s29 + $0x10] sm:$0xff] }
0x15b3   :  { %v3929_v56 = vpop.eup %3928 }
0x15b4   :  { %v2413_v58 = vmul.f32 %v3929_v56, %v2397_v38  ;;  %v2689_v56 = vld [vmem:[%s4544_s29 + $0x8] sm:$0xff] }
0x15b5   :  { %v3931_v59 = vpop.eup %3930 }
0x15b6   :  { %v2412_v60 = vmul.f32 %v3931_v59, %v2396_v41  ;;  %v2421_v62 = vmul.f32 %v3420_v57, %v2413_v58  ;;  %v2777_v58 = vld [vmem:[%s4545_s3] sm:$0x3f] }
0x15b7   :  { %v2779_v59 = vsel %vm2778_vm5, %v2777_v58, 0.0 }
0x15b8   :  { %v2420_v0 = vmul.f32 %v3420_v57, %v2412_v60  ;;  %v2429_v2 = vadd.f32 %v3421_v63, %v2421_v62  ;;  %v2688_v57 = vld [vmem:[%s4544_s29] sm:$0xff] }
0x15ba   :  { %v4425_v55 = vadd.f32 %v3421_v63, %v2420_v0 }
0x15bc   :  { %3749 = vmatprep.mubr.msk.f32.mxu0 %vm127_vm0, %v4425_v55 }
0x15bd   :  { %3750 = vmatmul.mubr.msk.f32.vlgmr.msra.gmra.mxu0 %vm127_vm0, %v2429_v2 }
0x15be   :  { %3779 = vmatprep.mubr.msk.f32.mxu0 %vm4002_vm1, %v4001_v34  ;;  %3772 = vmatpush3.msra.mxu0 %v2691_v52 }
0x15bf   :  { %3773 = vmatprep.subr.mxu0 %v4001_v34 }
0x15c0   :  { %3774 = vmatpush3.msra.mxu0 %v2690_v54  ;;  %v3050_v54 = vld [vmem:[%s4552_s12 + $0x18] sm:$0xff] }
0x15c1   :  { %3775 = vmatprep.subr.mxu0 %v4001_v34 }
0x15c2   :  { %3776 = vmatpush3.msra.mxu0 %v2689_v56  ;;  %v3049_v56 = vld [vmem:[%s4552_s12 + $0x10] sm:$0xff] }
0x15c3   :  { %3777 = vmatprep.subr.mxu0 %v4001_v34 }
0x15c4   :  { %3778 = vmatpush3.msra.mxu0 %v2688_v57  ;;  %v3048_v57 = vld [vmem:[%s4552_s12 + $0x8] sm:$0xff] }
0x15c5   :  { %3782 = vmatprep.subr.mxu0 %v4001_v34 }
0x167d   :  { %v3751_v12 = vpop.f32.mrf.mxu0 }
0x167e   :  { %v2521_v13 = vadd.f32 %v3751_v12, %v3427_v61 }
0x167f   :  { %v2515_v4 = vpop.f32.mrf.mxu0 }
0x1680   :  { %v2525_v14 = vmul.f32 %v2521_v13, %v2521_v13  ;;  %v2516_v15 = vadd.f32 %v3427_v61, %v2515_v4  ;;  %v2798_v4 = vld [vmem:[%s4546_s8 + $0x18] sm:$0xff] }
0x1682   :  { %v2527_v16 = vmul.f32 %v2525_v14, %v2521_v13  ;;  %v2524_v17 = vmul.f32 %v2516_v15, %v2516_v15 }
0x1684   :  { %v2529_v18 = vmul.f32 0.044715, %v2527_v16  ;;  %v2526_v6 = vmul.f32 %v2524_v17, %v2516_v15  ;;  %v2796_v16 = vld [vmem:[%s4546_s8 + $0x8] sm:$0xff]  ;;  %v2795_v17 = vld [vmem:[%s4546_s8] sm:$0xff] }
0x1686   :  { %v2531_v19 = vadd.f32 %v2529_v18, %v2521_v13  ;;  %v2528_v20 = vmul.f32 0.044715, %v2526_v6  ;;  %v2794_v18 = vld [vmem:[%s4547_s14] sm:$0x3f]  ;;  %v2783_v6 = vrot.slane %v2779_v59, 4 }
0x1688   :  { %v2533_v21 = vmul.f32 0.7978846, %v2531_v19  ;;  %v2530_v22 = vadd.f32 %v2528_v20, %v2516_v15  ;;  %v2784_v19 = vadd.f32 %v2783_v6, %v2779_v59 }
0x168a   :  { %3932 = vtanh.f32 %v2533_v21  ;;  %v2532_v23 = vmul.f32 0.7978846, %v2530_v22  ;;  %v2785_v20 = vrot.slane %v2784_v19, 2 }
0x168c   :  { %3934 = vtanh.f32 %v2532_v23  ;;  %v2786_v21 = vadd.f32 %v2785_v20, %v2784_v19 }
0x168e   :  { %v2787_v22 = vrot.slane %v2786_v21, 1 }
0x1697   :  { %v3933_v24 = vpop.eup %3932 }
0x1698   :  { %v2537_v25 = vadd.f32 1.0, %v3933_v24  ;;  %v2788_v24 = vadd.f32 %v2787_v22, %v2786_v21 }
0x1699   :  { %v3935_v26 = vpop.eup %3934 }
0x169a   :  { %v2536_v27 = vadd.f32 1.0, %v3935_v26  ;;  %v2539_v33 = vmul.f32 0.5, %v2537_v25  ;;  %v2789_v26 = vmax.f32 %v2788_v24, 1.0  ;;  %v3457_v24 = vld [vmem:[%s4160_s27] ss:$0 sm:$0xff] }
0x169c   :  { %v2538_v28 = vmul.f32 0.5, %v2536_v27  ;;  %v2541_v29 = vmul.f32 %v2539_v33, %v2521_v13 }
0x169e   :  { %v2540_v31 = vmul.f32 %v2538_v28, %v2516_v15  ;;  %v2797_v15 = vld [vmem:[%s4546_s8 + $0x10] sm:$0xff] }
0x16a0   :  { %3768 = vmatprep.mubr.msk.f32.mxu1 %vm1315_vm4, %v2540_v31 }
0x16a1   :  { %3769 = vmatmul.mubr.msk.f32.vlgmr.msra.gmra.mxu1 %vm1315_vm4, %v2541_v29 }
0x16a2   :  { %3795 = vmatprep.mubr.msk.f32.mxu1 %vm4002_vm1, %v4001_v34 }
0x1761   :  { %v3770_v32 = vpop.f32.mrf.mxu1 }
0x1762   :  { %v2637_v35 = vadd.f32 %v3770_v32, %v3439_v30 }
0x1763   :  { %v2631_v36 = vpop.f32.mrf.mxu1 }
0x1764   :  { %v2632_v38 = vadd.f32 %v3439_v30, %v2631_v36  ;;  %v2641_v40 = vadd.f32 %v2637_v35, %v2429_v2  ;;  %v2968_v36 = vld [vmem:[%s4548_s19 + $0x8] sm:$0xff] }
0x1766   :  { %v2649_v41 = vsel %vm127_vm0, %v2641_v40, 0.0  ;;  %v2640_v42 = vadd.f32 %v2632_v38, %v4425_v55  ;;  %v2967_v38 = vld [vmem:[%s4548_s19] sm:$0xff] }
0x1767   :  { %2650 = vadd.xlane.f32.xlu0 %v2649_v41  ;;  %v3449_v41 = vld [vmem:[%s4550_s30] ss:$0 sm:$0xff] }
0x1768   :  { %v2646_v37 = vsel %vm127_vm0, %v2640_v42, 0.0 }
0x1769   :  { %2647 = vadd.xlane.f32.xlu1 %v2646_v37 }
0x17f0   :  { %v2651_v43 = vpop.xlane.xlu0 %2650 }
0x17f1   :  { %v2653_v1 = vmul.f32 0.03125, %v2651_v43 }
0x17f2   :  { %v2648_v44 = vpop.xlane.xlu1 %2647 }
0x17f3   :  { %v2655_v45 = vsub.f32 %v2641_v40, %v2653_v1  ;;  %v2652_v46 = vmul.f32 0.03125, %v2648_v44  ;;  %v3054_v40 = vld [vmem:[%s4549_s24 + $0x18] sm:$0xff] }
0x17f5   :  { %v2654_v47 = vsub.f32 %v2640_v42, %v2652_v46  ;;  %v2657_v48 = vmul.f32 %v2655_v45, %v2655_v45 }
0x17f7   :  { %v2661_v49 = vsel %vm127_vm0, %v2657_v48, 0.0  ;;  %v2656_v50 = vmul.f32 %v2654_v47, %v2654_v47 }
0x17f8   :  { %2662 = vadd.xlane.f32.xlu0 %v2661_v49 }
0x17f9   :  { %v2658_v51 = vsel %vm127_vm0, %v2656_v50, 0.0 }
0x17fa   :  { %2659 = vadd.xlane.f32.xlu1 %v2658_v51 }
0x17fc   :  { %2780 = vadd.xlane.f32.xlu0 %v2779_v59 }
0x1881   :  { %v2663_v60 = vpop.xlane.xlu0 %2662 }
0x1882   :  { %v2665_v62 = vmul.f32 0.03125, %v2663_v60  ;;  %v3053_v60 = vld [vmem:[%s4549_s24 + $0x10] sm:$0xff] }
0x1883   :  { %v2660_v63 = vpop.xlane.xlu1 %2659 }
0x1884   :  { %v2667_v0 = vadd.f32 1e-12, %v2665_v62  ;;  %v2664_v55 = vmul.f32 0.03125, %v2660_v63  ;;  %v3052_v62 = vld [vmem:[%s4549_s24 + $0x8] sm:$0xff]  ;;  %v3051_v63 = vld [vmem:[%s4549_s24] sm:$0xff] }
0x1885   :  { %v2781_v23 = vpop.xlane.xlu0 %2780 }
0x1886   :  { %3936 = vrsqrt.f32 %v2667_v0  ;;  %v2666_v2 = vadd.f32 1e-12, %v2664_v55  ;;  %v2782_v25 = vmax.f32 %v2781_v23, 1.0  ;;  %v2969_v0 = vld [vmem:[%s4553_s20] sm:$0x1] }
0x1888   :  { %3938 = vrsqrt.f32 %v2666_v2 }
0x1889   :  { %3940 = vrsqrt.f32 %v2782_v25 }
0x188a   :  { %3942 = vrsqrt.f32 %v2789_v26 }
0x1893   :  { %v3937_v3 = vpop.eup %3936 }
0x1894   :  { %v2671_v39 = vmul.f32 %v3937_v3, %v2655_v45  ;;  %v3446_v45 = vld [vmem:[%s4551_s6] ss:$0 sm:$0xff] }
0x1895   :  { %v3939_v7 = vpop.eup %3938 }
0x1896   :  { %v2670_v9 = vmul.f32 %v3939_v7, %v2654_v47  ;;  %v2679_v10 = vmul.f32 %v3444_v5, %v2671_v39  ;;  %v3941_v27 = vpop.eup %3940 }
0x1897   :  { %v2791_v31 = vmul.f32 %v3941_v27, %v2777_v58  ;;  %v3943_v29 = vpop.eup %3942  ;;  %v3047_v58 = vld [vmem:[%s4552_s12] sm:$0xff] }
0x1898   :  { %v2678_v11 = vmul.f32 %v3444_v5, %v2670_v9  ;;  %v2687_v61 = vadd.f32 %v3445_v8, %v2679_v10  ;;  %v4010_v9 = vmov 0   ;;  %v3230_v10 = vld [vmem:[%s4155_s13 + $0x18] sm:$0xff] }
0x1899   :  { %v2793_v30 = vmul.f32 %v3943_v29, %v2791_v31  ;;  %3878 = vset.pattern.permute.xlu1 %v4010_v9 }
0x189a   :  { %v2686_v12 = vadd.f32 %v3445_v8, %v2678_v11  ;;  %v2701_v13 = vrot.slane %v2687_v61, 7  ;;  %v4009_v8 = vmov 1   ;;  %v3229_v11 = vld [vmem:[%s4155_s13 + $0x10] sm:$0xff]  ;;  %v3455_v61 = vld [vmem:[%s4150_s17] ss:$0 sm:$0xff]  ;;  %s4011_s17 = smov [#allocation2]  }
0x189b   :  { %3879 = vset.pattern.permute.xlu0 %v4009_v8  ;;  %s3319_s11 = sshll.u32 %s4011_s17, 4  ;;  %s3320_s11 = int_to_ptr.vmem [resolvable:$true] %s3319_s11 }
0x189c   :  { %v2703_v14 = vsel %vm2702_vm6, %v2701_v13, %v2686_v12  ;;  %p3955_p1 = scmp.lt.s32.totalorder %s3320_s11, %s3320_s11 }
0x189d   :  { %3780 = vmatmul.mubr.msk.f32.vlgmr.msra.gmra.mxu0 %vm127_vm0, %v2703_v14 }
0x189e   :  { %3783 = vmatpush3.msra.mxu0 %v2798_v4  ;;  %3790 = vmatprep.mubr.msk.f32.mxu0 %vm4002_vm1, %v4001_v34 }
0x189f   :  { %3784 = vmatprep.subr.mxu0 %v4001_v34 }
0x18a0   :  { %3785 = vmatpush3.msra.mxu0 %v2797_v15 }
0x18a1   :  { %3786 = vmatprep.subr.mxu0 %v4001_v34 }
0x18a2   :  { %3787 = vmatpush3.msra.mxu0 %v2796_v16 }
0x18a3   :  { %3788 = vmatprep.subr.mxu0 %v4001_v34 }
0x18a4   :  { %3789 = vmatpush3.msra.mxu0 %v2795_v17  ;;  %v3228_v17 = vld [vmem:[%s4155_s13 + $0x8] sm:$0xff] }
0x18a5   :  { %3791 = vmatmul.mubr.msk.f32.vlgmr.msra.gmra.mxu0 %vm127_vm0, %v2794_v18  ;;  %3805 = vmatprep.subr.mxu0 %v4001_v34  ;;  %v3227_v18 = vld [vmem:[%s4155_s13] sm:$0xff]  ;;  %s3950_s13 = scalar_lea.vmem %s3320_s11, 32 }
0x18a6   :  { %3813 = vmatprep.mubr.msk.f32.mxu0 %vm4002_vm1, %v4001_v34  ;;  %3806 = vmatpush3.msra.mxu0 %v3054_v40  ;;  %p3951_p0 = scmp.ne.s32.totalorder %s3320_s11, %s3950_s13  ;;  %p3956_p2 = scmp.lt.s32.totalorder %s3950_s13, %s3950_s13 }
0x18a7   :  { %3807 = vmatprep.subr.mxu0 %v4001_v34 }
0x18a8   :  { %3808 = vmatpush3.msra.mxu0 %v3053_v60  ;;  %p3957_p3 = por %p3956_p2, %p3955_p1 }
0x18a9   :  { %3809 = vmatprep.subr.mxu0 %v4001_v34 }
0x18aa   :  { %3810 = vmatpush3.msra.mxu0 %v3052_v62  ;;  %p3958_p4 = pnand %p3957_p3, %p3951_p0 }
0x18ab   :  { %3811 = vmatprep.subr.mxu0 %v4001_v34 }
0x18ac   :  { %3812 = vmatpush3.msra.mxu0 %v3051_v63 }
0x18ad   :  { %3827 = vmatprep.subr.mxu0 %v4001_v34 }
0x195d   :  { %v2772_v33 = vpop.f32.mrf.mxu0 }
0x195e   :  { %v2773_v47 = vadd.f32 %v3446_v45, %v2772_v33 }
0x195f   :  { %v3781_v28 = vpop.f32.mrf.mxu0 }
0x1960   :  { %3944 = vtanh.f32 %v2773_v47 }
0x1965   :  { %v2868_v32 = vpop.f32.mrf.mxu0 }
0x1966   :  { %3794 = vmatpush3.msk.msra.mxu1 %vm2883_vm7, %v2868_v32 }
0x1967   :  { %v3792_v35 = vpop.f32.mrf.mxu0  ;;  %3796 = vmatmul.mubr.msk.f32.vlgmr.msra.gmra.mxu1 %vm2879_vm8, %v2793_v30  ;;  %3798 = vmatprep.subr.mxu1 %v4001_v34 }
0x1968   :  { %3802 = vmatprep.mubr.msk.f32.mxu1 %vm4002_vm1, %v4001_v34  ;;  %3799 = vmatpush3.msra.mxu1 %v2968_v36 }
0x1969   :  { %3800 = vmatprep.subr.mxu1 %v4001_v34 }
0x196a   :  { %3801 = vmatpush3.msra.mxu1 %v2967_v38 }
0x196b   :  { %3816 = vmatprep.subr.mxu1 %v4001_v34 }
0x196d   :  { %v3945_v59 = vpop.eup %3944 }
0x1a27   :  { %v2953_v42 = vpop.f32.mrf.mxu1 }
0x1a28   :  { %v2954_v37 = vadd.f32 %v3449_v41, %v2953_v42 }
0x1a29   :  { %v3797_v43 = vpop.f32.mrf.mxu1 }
0x1a2a   :  { %v2958_v1 = vsel %vm2957_vm9, %v2954_v37, 0.0 }
0x1a2b   :  { %v2959_v44 = vrot.slane %v2958_v1, 4 }
0x1a2d   :  { %v2960_v46 = vadd.f32 %v2959_v44, %v2958_v1 }
0x1a2f   :  { %v2961_v48 = vrot.slane %v2960_v46, 2 }
0x1a31   :  { %v2962_v49 = vadd.f32 %v2961_v48, %v2960_v46 }
0x1a33   :  { %v2963_v50 = vrot.slane %v2962_v49, 1 }
0x1a35   :  { %v2964_v51 = vadd.f32 %v2963_v50, %v2962_v49 }
0x1a37   :  { %v2966_v52 = vmul.f32 0.16666667, %v2964_v51 }
0x1a39   :  { %3803 = vmatmul.mubr.msk.f32.vlgmr.msra.gmra.mxu1 %vm299_vm2, %v2966_v52 }
0x1a3a   :  { %3817 = vmatpush3.msra.mxu1 %v3050_v54  ;;  %3824 = vmatprep.mubr.msk.f32.mxu1 %vm4002_vm1, %v4001_v34 }
0x1a3b   :  { %3818 = vmatprep.subr.mxu1 %v4001_v34 }
0x1a3c   :  { %3819 = vmatpush3.msra.mxu1 %v3049_v56 }
0x1a3d   :  { %3820 = vmatprep.subr.mxu1 %v4001_v34 }
0x1a3e   :  { %3821 = vmatpush3.msra.mxu1 %v3048_v57 }
0x1a3f   :  { %3822 = vmatprep.subr.mxu1 %v4001_v34 }
0x1a40   :  { %3823 = vmatpush3.msra.mxu1 %v3047_v58 }
0x1a41   :  { %3825 = vmatmul.mubr.msk.f32.vlgmr.msra.gmra.mxu1 %vm127_vm0, %v3945_v59 }
0x1af9   :  { %v3039_v55 = vpop.f32.mrf.mxu1 }
0x1afa   :  { %v3040_v2 = vadd.f32 %v3039_v55, %v2969_v0 }
0x1afb   :  { %v3804_v3 = vpop.f32.mrf.mxu1 }
0x1afc   :  { %v3046_v5 = vrot.slane %v3040_v2, %v4212_v53 }
0x1afe   :  { %3814 = vmatmul.mubr.msk.f32.vlgmr.msra.gmra.mxu0 %vm127_vm0, %v3046_v5 }
0x1aff   :  { %3835 = vmatprep.mubr.msk.f32.mxu0 %vm4002_vm1, %v4001_v34  ;;  %3828 = vmatpush3.msra.mxu0 %v3230_v10 }
0x1b00   :  { %3829 = vmatprep.subr.mxu0 %v4001_v34 }
0x1b01   :  { %v3197_v39 = vpop.f32.mrf.mxu1  ;;  %3830 = vmatpush3.msra.mxu0 %v3229_v11 }
0x1b02   :  { %3831 = vmatprep.subr.mxu0 %v4001_v34 }
0x1b03   :  { %v3826_v7 = vpop.f32.mrf.mxu1  ;;  %3832 = vmatpush3.msra.mxu0 %v3228_v17 }
0x1b04   :  { %3833 = vmatprep.subr.mxu0 %v4001_v34 }
0x1b05   :  { %3834 = vmatpush3.msra.mxu0 %v3227_v18 }
0x1bbe   :  { %v3124_v53 = vpop.f32.mrf.mxu0 }
0x1bbf   :  { %v3198_v12 = vadd.f32 %v3197_v39, %v3124_v53 }
0x1bc0   :  { %v3815_v13 = vpop.f32.mrf.mxu0 }
0x1bc1   :  { %v3208_v4 = vadd.f32 %v3455_v61, %v3198_v12 }
0x1bc3   :  { %v3456_v14 = vmul.f32 -1.442695, %v3208_v4 }
0x1bc5   :  { %3946 = vpow2.f32 %v3456_v14 }
0x1bd2   :  { %v3947_v15 = vpop.eup %3946 }
0x1bd3   :  { %v3212_v16 = vadd.f32 1.0, %v3947_v15 }
0x1bd5   :  { %3948 = vrcp.f32 %v3212_v16 }
0x1be2   :  { %v3949_v6 = vpop.eup %3948 }
0x1be3   :  { %3222 = vperm.xlu0 %3879, %v3949_v6   ;;  %3217 = vperm.xlu1 %3878, %v3949_v6  }
0x1c5e   :  { %v3223_v19 = vpop.permute.xlu0 %3222  ;;  %v3218_v20 = vpop.permute.xlu1 %3217 }
0x1c5f   :  { %v3225_v21 = vmul.f32 %v3223_v19, %v3046_v5  ;;  %v3220_v22 = vmul.f32 %v3945_v59, %v3218_v20 }
0x1c61   :  { %v3226_v23 = vadd.f32 %v3225_v21, %v3220_v22 }
0x1c63   :  { %3836 = vmatmul.mubr.msk.f32.vlgmr.msra.gmra.mxu0 %vm127_vm0, %v3226_v23 }
0x1d23   :  { %v3307_v25 = vpop.f32.mrf.mxu0 }
0x1d24   :  { %v3308_v26 = vadd.f32 %v3457_v24, %v3307_v25 }
0x1d25   :  { %v3837_v27 = vpop.f32.mrf.mxu0 }
0x1d26   :  { %3312 = vst.msk [vmem:[#allocation2] sm:$0x3] %vm3311_vm10, %v3308_v26 }
0x1d27   :  { %3961 = shalt.err (!%p3958_p4)
}
0x1d28   :  { %3322 = dma.vmem_to_hbm [thread:$0]  %s3320_s11, 32, %s4165_s4, [#allocation3]  }
0x1d29   :  { %3970 = dma.done.wait [#allocation3], 32  }
0x1d2a   :  { %3971 = vsyncadd [#allocation3], 4294967264 }
0x1d2b   :  { %3326 = vsyncpa [#allocation3], 1 }

</bundles_post_ra>
